<compile_context>
chip_gen: v7x
topology: tpu7x:2x2x1
jax: 0.10.0
libtpu: 0.0.40
codegen_flags: <defaults>
</compile_context>

<pallas_src>
import functools

import jax
import jax.numpy as jnp
from jax.experimental import pallas as pl
from jax.experimental.pallas import tpu as pltpu


def _round_up(x, m):
    return (x + m - 1) // m * m


def _layernorm(x, g, b, eps=1e-5):
    # f32 statistics (v5e has no native bf16 VPU/EUP).
    x = x.astype(jnp.float32)
    mean = jnp.mean(x, axis=-1, keepdims=True)
    var = jnp.mean((x - mean) ** 2, axis=-1, keepdims=True)
    return (x - mean) * jax.lax.rsqrt(var + eps) * g + b


# ----------------------------------------------------------------------------
# Fused kernel: patch embed (+pos, +ln_pre) at l==0, then one ResidualAttentionBlock
# per grid step along the layer axis.  grid = (batch_blocks, layers).
# ----------------------------------------------------------------------------
def vit_kernel(patches_ref, convw_ref, pos_ref, gpre_ref, bpre_ref,
               g1_ref, b1_ref, wqkv_ref, bqkv_ref, wo_ref, bo_ref,
               g2_ref, b2_ref, wfc_ref, bfc_ref, wpr_ref, bpr_ref,
               o_ref, ctx_ref, *, n_head, bf16_act):
    l = pl.program_id(1)
    Bt, S, D = o_ref.shape
    R = Bt * S
    hd = D // n_head

    # --- once per batch block: patch embedding + positional embedding + ln_pre ---
    @pl.when(l == 0)
    def _():
        pt = patches_ref[...].reshape(R, patches_ref.shape[-1])            # (R, Kp) bf16
        emb = jnp.dot(pt, convw_ref[...], preferred_element_type=jnp.float32)  # (R, D) f32
        emb = emb.reshape(Bt, S, D) + pos_ref[...]
        o_ref[...] = _layernorm(emb, gpre_ref[...], bpre_ref[...])

    # Cross-layer carry lives in the output block (constant block index along l -> VMEM
    # resident across layers, one HBM writeback per batch block).
    x = o_ref[...].reshape(R, D)                                           # (R, D) f32

    # ----- attention branch (nn.MultiheadAttention, no mask, DropPath(0)=identity) -----
    h = _layernorm(x, g1_ref[0], b1_ref[0]).astype(jnp.bfloat16)
    # Fused QKV projection over the whole batch block; 1/sqrt(hd) already folded into Q.
    y = jnp.dot(h, wqkv_ref[0], preferred_element_type=jnp.float32) + bqkv_ref[0]   # (R, 3D)

    for b in range(Bt):                       # static unroll, Bt is small (<=4)
        r0 = b * S
        for hi in range(n_head):              # static unroll
            c0 = hi * hd
            qh = y[r0:r0 + S, c0:c0 + hd].astype(jnp.bfloat16)              # (S, hd)
            kh = y[r0:r0 + S, D + c0:D + c0 + hd].astype(jnp.bfloat16)      # (S, hd)
            vh = y[r0:r0 + S, 2 * D + c0:2 * D + c0 + hd].astype(jnp.bfloat16)
            s = jax.lax.dot_general(qh, kh, (((1,), (1,)), ((), ())),
                                    preferred_element_type=jnp.float32)     # q @ k^T (S, S)
            s = s - jnp.max(s, axis=-1, keepdims=True)
            e = jnp.exp(s)
            p = e * pl.reciprocal(jnp.sum(e, axis=-1, keepdims=True), approx=True)
            ch = jnp.dot(p.astype(jnp.bfloat16), vh,
                         preferred_element_type=jnp.float32)                # (S, hd)
            # Write directly into the preallocated context slab (no list + concatenate).
            ctx_ref[r0:r0 + S, c0:c0 + hd] = ch.astype(jnp.bfloat16)

    attn = jnp.dot(ctx_ref[...], wo_ref[0],
                   preferred_element_type=jnp.float32) + bo_ref[0]          # (R, D)
    x = x + attn                                                            # residual

    # ----- MLP branch -----
    h2 = _layernorm(x, g2_ref[0], b2_ref[0]).astype(jnp.bfloat16)
    m = jnp.dot(h2, wfc_ref[0], preferred_element_type=jnp.float32) + bfc_ref[0]     # (R, 4D)
    if bf16_act:
        mb = m.astype(jnp.bfloat16)
        act = mb * jax.nn.sigmoid(1.702 * mb)                 # QuickGELU, bf16 EUP on v6e/v7x
    else:
        act = (m * jax.nn.sigmoid(1.702 * m)).astype(jnp.bfloat16)   # f32 math on v5e
    x = x + (jnp.dot(act, wpr_ref[0], preferred_element_type=jnp.float32) + bpr_ref[0])

    o_ref[...] = x.reshape(Bt, S, D)                                        # carry / final out


# ----------------------------------------------------------------------------
# Parameters (PyTorch-faithful layout) and one-time kernel-ready preparation
# ----------------------------------------------------------------------------
def init_params(key, input_resolution, patch_size, width, layers, heads):
    D = width
    n_pos = (input_resolution // patch_size) ** 2 + 1
    keys = jax.random.split(key, 2 + layers)
    scale = D ** (-0.5)
    params = {
        "conv_w": 0.02 * jax.random.normal(keys[0], (D, 3, patch_size, patch_size), jnp.float32),
        "pos_embed": scale * jax.random.normal(keys[1], (n_pos, D), jnp.float32),
        "ln_pre_g": jnp.ones((D,), jnp.float32),
        "ln_pre_b": jnp.zeros((D,), jnp.float32),
        "blocks": [],
    }
    for li in range(layers):
        ks = jax.random.split(keys[2 + li], 8)
        blk = {
            "ln1_g": jnp.ones((D,), jnp.float32),
            "ln1_b": jnp.zeros((D,), jnp.float32),
            "in_proj_w": 0.02 * jax.random.normal(ks[0], (3 * D, D), jnp.float32),
            "in_proj_b": 0.02 * jax.random.normal(ks[1], (3 * D,), jnp.float32),
            "out_proj_w": 0.02 * jax.random.normal(ks[2], (D, D), jnp.float32),
            "out_proj_b": 0.02 * jax.random.normal(ks[3], (D,), jnp.float32),
            "ln2_g": jnp.ones((D,), jnp.float32),
            "ln2_b": jnp.zeros((D,), jnp.float32),
            "fc_w": 0.02 * jax.random.normal(ks[4], (4 * D, D), jnp.float32),
            "fc_b": 0.02 * jax.random.normal(ks[5], (4 * D,), jnp.float32),
            "proj_w": 0.02 * jax.random.normal(ks[6], (D, 4 * D), jnp.float32),
            "proj_b": 0.02 * jax.random.normal(ks[7], (D,), jnp.float32),
        }
        params["blocks"].append(blk)
    return params


def prepare_params(params, *, patch_size, heads):
    """One-time host-side transposes / stacking / bf16 casting / scale folding."""
    D = params["conv_w"].shape[0]
    p = patch_size
    K = 3 * p * p
    Kp = _round_up(K, 128)                                      # lane-dense contraction dim

    conv_w = params["conv_w"].reshape(D, K).T                   # (K, D)
    conv_w = jnp.pad(conv_w, ((0, Kp - K), (0, 0))).astype(jnp.bfloat16)

    pos = params["pos_embed"][1:].astype(jnp.float32)           # class-token row unused by fwd

    att_scale = float(D // heads) ** (-0.5)
    blocks = params["blocks"]

    def stack(fn):
        return jnp.stack([fn(b) for b in blocks], axis=0)

    def qkv_w(b):
        w = b["in_proj_w"]                                      # (3D, D), rows [Wq; Wk; Wv]
        w = jnp.concatenate([w[:D] * att_scale, w[D:]], axis=0)  # fold 1/sqrt(hd) into Q
        return w.T                                              # (D, 3D)

    def qkv_b(b):
        bb = b["in_proj_b"]
        return jnp.concatenate([bb[:D] * att_scale, bb[D:]]).reshape(1, 3 * D)

    return {
        "conv_w": conv_w,                                               # (Kp, D) bf16
        "pos": pos,                                                     # (S, D) f32
        "ln_pre_g": params["ln_pre_g"].reshape(1, D),
        "ln_pre_b": params["ln_pre_b"].reshape(1, D),
        "ln1_g": stack(lambda b: b["ln1_g"].reshape(1, D)),             # (L, 1, D)
        "ln1_b": stack(lambda b: b["ln1_b"].reshape(1, D)),
        "w_qkv": stack(qkv_w).astype(jnp.bfloat16),                     # (L, D, 3D), Q pre-scaled
        "b_qkv": stack(qkv_b),                                          # (L, 1, 3D), Q pre-scaled
        "w_out": stack(lambda b: b["out_proj_w"].T).astype(jnp.bfloat16),   # (L, D, D)
        "b_out": stack(lambda b: b["out_proj_b"].reshape(1, D)),
        "ln2_g": stack(lambda b: b["ln2_g"].reshape(1, D)),
        "ln2_b": stack(lambda b: b["ln2_b"].reshape(1, D)),
        "w_fc": stack(lambda b: b["fc_w"].T).astype(jnp.bfloat16),          # (L, D, 4D)
        "b_fc": stack(lambda b: b["fc_b"].reshape(1, 4 * D)),
        "w_pr": stack(lambda b: b["proj_w"].T).astype(jnp.bfloat16),        # (L, 4D, D)
        "b_pr": stack(lambda b: b["proj_b"].reshape(1, D)),
    }


# ----------------------------------------------------------------------------
# Forward
# ----------------------------------------------------------------------------
def _vmem_budget():
    try:
        cap = int(pltpu.get_tpu_info().vmem_capacity_bytes)
    except Exception:
        cap = 64 * 1024 * 1024                       # conservative fallback (v7x-sized)
    # ~96 MiB on 128-MiB VMEM parts (v5e/v6e), ~48 MiB on v7x's 64 MiB.
    return min(cap * 3 // 4, 100 * 1024 * 1024)


def _pick_batch_block(B, S, D, vmem_limit):
    """Largest Bt<=4 dividing B that fits the activation working set; keeps >=2 batch
    blocks when B>=4 so both v7x TensorCores stay busy under 'parallel' batch sharding."""
    per_img = S * D * 4 * 10 + S * D * 2            # rough f32 working set + bf16 ctx slab
    best = 1
    for bt in range(1, min(B, 4) + 1):
        if B % bt:
            continue
        if bt * per_img > vmem_limit // 3:
            continue
        if B >= 4 and B // bt < 2:
            continue
        best = bt
    return best


def vision_transformer_forward(x, prep, *, input_resolution, patch_size, heads,
                               batch_block=None):
    B, C, H, W = x.shape
    p = patch_size
    h, w = H // p, W // p
    S = h * w
    Kp, D = prep["conv_w"].shape
    K = C * p * p
    L = prep["w_qkv"].shape[0]

    # TODO(synk): bilinear F.interpolate resize of the positional embedding for
    # resolution != input_resolution is not implemented (equal-resolution path only).
    assert H == input_resolution and W == input_resolution
    assert prep["pos"].shape[0] == S

    # ---- glue: extract non-overlapping patches (== strided conv unfold) ----
    patches = x.reshape(B, C, h, p, w, p).transpose(0, 2, 4, 1, 3, 5).reshape(B, S, K)
    if Kp != K:
        patches = jnp.pad(patches, ((0, 0), (0, 0), (0, Kp - K)))
    patches = patches.astype(jnp.bfloat16)

    vmem_limit = _vmem_budget()
    Bt = batch_block if batch_block is not None else _pick_batch_block(B, S, D, vmem_limit)
    assert B % Bt == 0

    kind = jax.devices()[0].device_kind.lower()
    bf16_act = ("v6" in kind) or ("v7" in kind)      # bf16 VPU/EUP only on v6e/v7x

    # v7x (64 MiB VMEM) escape hatch: if double-buffering the full per-layer weight stack
    # would eat most of the budget (D>=1024), single-buffer the two large MLP weights.
    per_layer_w_bytes = 2 * (3 * D * D + D * D + 4 * D * D + 4 * D * D)   # bf16, single buffer
    mlp_mode = pl.Buffered(1) if 2 * per_layer_w_bytes > int(0.6 * vmem_limit) else None

    def fixed(shape):
        return pl.BlockSpec(shape, lambda b, l: (0,) * len(shape))

    def wspec(shape, mode=None):
        if mode is None:
            return pl.BlockSpec((1,) + shape, lambda b, l: (l, 0, 0))
        return pl.BlockSpec((1,) + shape, lambda b, l: (l, 0, 0), pipeline_mode=mode)

    tok_spec = pl.BlockSpec((Bt, S, D), lambda b, l: (b, 0, 0))

    y = pl.pallas_call(
        functools.partial(vit_kernel, n_head=heads, bf16_act=bf16_act),
        out_shape=jax.ShapeDtypeStruct((B, S, D), jnp.float32),
        grid=(B // Bt, L),
        in_specs=[pl.BlockSpec((Bt, S, Kp), lambda b, l: (b, 0, 0)),   # patches
                  fixed((Kp, D)), fixed((S, D)), fixed((1, D)), fixed((1, D)),
                  wspec((1, D)), wspec((1, D)),
                  wspec((D, 3 * D)), wspec((1, 3 * D)),
                  wspec((D, D)), wspec((1, D)),
                  wspec((1, D)), wspec((1, D)),
                  wspec((D, 4 * D), mlp_mode), wspec((1, 4 * D)),
                  wspec((4 * D, D), mlp_mode), wspec((1, D))],
        out_specs=tok_spec,
        scratch_shapes=[pltpu.VMEM((Bt * S, D), jnp.bfloat16)],         # attention ctx slab
        compiler_params=pltpu.CompilerParams(
            dimension_semantics=("parallel", "arbitrary"),
            vmem_limit_bytes=vmem_limit),
    )(patches, prep["conv_w"], prep["pos"], prep["ln_pre_g"], prep["ln_pre_b"],
      prep["ln1_g"], prep["ln1_b"],
      prep["w_qkv"], prep["b_qkv"],
      prep["w_out"], prep["b_out"],
      prep["ln2_g"], prep["ln2_b"],
      prep["w_fc"], prep["b_fc"],
      prep["w_pr"], prep["b_pr"])

    # ---- glue: (B, S, D) -> (B, D, h, w), matching the PyTorch output layout ----
    return jnp.transpose(y, (0, 2, 1)).reshape(B, D, h, w)


if __name__ == "__main__":
    key = jax.random.PRNGKey(0)
    kx, kp = jax.random.split(key)

    input_resolution = 32
    patch_size = 8          # -> 4x4 = 16 patch tokens
    width = 128
    layers = 2
    heads = 4
    batch = 2

    x = jax.random.normal(kx, (batch, 3, input_resolution, input_resolution), jnp.float32)
    params = init_params(kp, input_resolution, patch_size, width, layers, heads)
    prep = prepare_params(params, patch_size=patch_size, heads=heads)

    fwd = jax.jit(functools.partial(
        vision_transformer_forward,
        input_resolution=input_resolution, patch_size=patch_size, heads=heads))

    y = fwd(x, prep)
    jax.block_until_ready(y)

    expected = (batch, width, input_resolution // patch_size, input_resolution // patch_size)
    assert y.shape == expected, (y.shape, expected)
    assert bool(jnp.all(jnp.isfinite(y)))
    print("KERNEL_OK")
</pallas_src>

<mosaic_0001>
module attributes {stable_mosaic.version = 11 : i64} {
  func.func @vit_kernel(%arg0: i32, %arg1: i32, %arg2: memref<2x16x256xbf16, #tpu.memory_space<vmem>>, %arg3: memref<256x128xbf16, #tpu.memory_space<vmem>>, %arg4: memref<16x128xf32, #tpu.memory_space<vmem>>, %arg5: memref<1x128xf32, #tpu.memory_space<vmem>>, %arg6: memref<1x128xf32, #tpu.memory_space<vmem>>, %arg7: memref<1x1x128xf32, #tpu.memory_space<vmem>>, %arg8: memref<1x1x128xf32, #tpu.memory_space<vmem>>, %arg9: memref<1x128x384xbf16, #tpu.memory_space<vmem>>, %arg10: memref<1x1x384xf32, #tpu.memory_space<vmem>>, %arg11: memref<1x128x128xbf16, #tpu.memory_space<vmem>>, %arg12: memref<1x1x128xf32, #tpu.memory_space<vmem>>, %arg13: memref<1x1x128xf32, #tpu.memory_space<vmem>>, %arg14: memref<1x1x128xf32, #tpu.memory_space<vmem>>, %arg15: memref<1x128x512xbf16, #tpu.memory_space<vmem>>, %arg16: memref<1x1x512xf32, #tpu.memory_space<vmem>>, %arg17: memref<1x512x128xbf16, #tpu.memory_space<vmem>>, %arg18: memref<1x1x128xf32, #tpu.memory_space<vmem>>, %arg19: memref<2x16x128xf32, #tpu.memory_space<vmem>>, %arg20: memref<32x128xbf16, #tpu.memory_space<vmem>>) attributes {dimension_semantics = [#tpu.dimension_semantics<parallel>, #tpu.dimension_semantics<arbitrary>], iteration_bounds = array<i64: 1, 2>, scalar_prefetch = 0 : i64, scratch_operands = 1 : i64, tpu.core_type = #tpu.core_type<tc>, window_params = [{transform_indices = @transform_0, window_bounds = array<i64: 2, 16, 256>}, {pipeline_mode = #tpu.pipeline_mode<synchronous>, transform_indices = @transform_1, window_bounds = array<i64: 256, 128>}, {pipeline_mode = #tpu.pipeline_mode<synchronous>, transform_indices = @transform_2, window_bounds = array<i64: 16, 128>}, {pipeline_mode = #tpu.pipeline_mode<synchronous>, transform_indices = @transform_3, window_bounds = array<i64: 1, 128>}, {pipeline_mode = #tpu.pipeline_mode<synchronous>, transform_indices = @transform_4, window_bounds = array<i64: 1, 128>}, {transform_indices = @transform_5, window_bounds = array<i64: 1, 1, 128>}, {transform_indices = @transform_6, window_bounds = array<i64: 1, 1, 128>}, {transform_indices = @transform_7, window_bounds = array<i64: 1, 128, 384>}, {transform_indices = @transform_8, window_bounds = array<i64: 1, 1, 384>}, {transform_indices = @transform_9, window_bounds = array<i64: 1, 128, 128>}, {transform_indices = @transform_10, window_bounds = array<i64: 1, 1, 128>}, {transform_indices = @transform_11, window_bounds = array<i64: 1, 1, 128>}, {transform_indices = @transform_12, window_bounds = array<i64: 1, 1, 128>}, {transform_indices = @transform_13, window_bounds = array<i64: 1, 128, 512>}, {transform_indices = @transform_14, window_bounds = array<i64: 1, 1, 512>}, {transform_indices = @transform_15, window_bounds = array<i64: 1, 512, 128>}, {transform_indices = @transform_16, window_bounds = array<i64: 1, 1, 128>}, {transform_indices = @transform_17, window_bounds = array<i64: 2, 16, 128>}]} {
    %c0_i32 = arith.constant 0 : i32
    %0 = arith.cmpi eq, %arg1, %c0_i32 : i32
    %1 = arith.extui %0 : i1 to i32
    %c0_i32_0 = arith.constant 0 : i32
    %2 = arith.cmpi ne, %1, %c0_i32_0 : i32
    scf.if %2 {
      %c0_103 = arith.constant 0 : index
      %c0_104 = arith.constant 0 : index
      %c0_105 = arith.constant 0 : index
      %269 = vector.load %arg2[%c0_103, %c0_104, %c0_105] : memref<2x16x256xbf16, #tpu.memory_space<vmem>>, vector<2x16x256xbf16>
      %270 = vector.shape_cast %269 : vector<2x16x256xbf16> to vector<32x256xbf16>
      %c0_106 = arith.constant 0 : index
      %c0_107 = arith.constant 0 : index
      %271 = vector.load %arg3[%c0_106, %c0_107] : memref<256x128xbf16, #tpu.memory_space<vmem>>, vector<256x128xbf16>
      %cst_108 = arith.constant dense<0.000000e+00> : vector<32x128xf32>
      %272 = tpu.matmul %270, %271, %cst_108 {dimension_numbers = #tpu.dot_dimension_numbers<[1], [0], [0], [1], [0, 0, 1, 1], [], []>} : vector<32x256xbf16>, vector<256x128xbf16>, vector<32x128xf32> -> vector<32x128xf32>
      %273 = vector.shape_cast %272 : vector<32x128xf32> to vector<2x16x128xf32>
      %c0_109 = arith.constant 0 : index
      %c0_110 = arith.constant 0 : index
      %274 = vector.load %arg4[%c0_109, %c0_110] : memref<16x128xf32, #tpu.memory_space<vmem>>, vector<16x128xf32>
      %275 = vector.shape_cast %274 : vector<16x128xf32> to vector<1x16x128xf32>
      %276 = vector.broadcast %275 : vector<1x16x128xf32> to vector<2x16x128xf32>
      %277 = arith.addf %273, %276 : vector<2x16x128xf32>
      %c0_111 = arith.constant 0 : index
      %c0_112 = arith.constant 0 : index
      %278 = vector.load %arg5[%c0_111, %c0_112] : memref<1x128xf32, #tpu.memory_space<vmem>>, vector<1x128xf32>
      %c0_113 = arith.constant 0 : index
      %c0_114 = arith.constant 0 : index
      %279 = vector.load %arg6[%c0_113, %c0_114] : memref<1x128xf32, #tpu.memory_space<vmem>>, vector<1x128xf32>
      %cst_115 = arith.constant dense<0.000000e+00> : vector<2x16xf32>
      %280 = vector.multi_reduction <add>, %277, %cst_115 [2] : vector<2x16x128xf32> to vector<2x16xf32>
      %281 = vector.shape_cast %280 : vector<2x16xf32> to vector<2x16x1xf32>
      %cst_116 = arith.constant 1.280000e+02 : f32
      %282 = vector.broadcast %cst_116 : f32 to vector<2x16x1xf32>
      %283 = arith.divf %281, %282 : vector<2x16x1xf32>
      %284 = vector.broadcast %283 : vector<2x16x1xf32> to vector<2x16x128xf32>
      %285 = arith.subf %277, %284 : vector<2x16x128xf32>
      %286 = arith.mulf %285, %285 : vector<2x16x128xf32>
      %cst_117 = arith.constant dense<0.000000e+00> : vector<2x16xf32>
      %287 = vector.multi_reduction <add>, %286, %cst_117 [2] : vector<2x16x128xf32> to vector<2x16xf32>
      %288 = vector.shape_cast %287 : vector<2x16xf32> to vector<2x16x1xf32>
      %cst_118 = arith.constant 1.280000e+02 : f32
      %289 = vector.broadcast %cst_118 : f32 to vector<2x16x1xf32>
      %290 = arith.divf %288, %289 : vector<2x16x1xf32>
      %291 = vector.broadcast %283 : vector<2x16x1xf32> to vector<2x16x128xf32>
      %292 = arith.subf %277, %291 : vector<2x16x128xf32>
      %cst_119 = arith.constant 9.99999974E-6 : f32
      %293 = vector.broadcast %cst_119 : f32 to vector<2x16x1xf32>
      %294 = arith.addf %290, %293 : vector<2x16x1xf32>
      %295 = math.rsqrt %294 : vector<2x16x1xf32>
      %296 = vector.broadcast %295 : vector<2x16x1xf32> to vector<2x16x128xf32>
      %297 = arith.mulf %292, %296 : vector<2x16x128xf32>
      %298 = vector.shape_cast %278 : vector<1x128xf32> to vector<1x1x128xf32>
      %299 = vector.broadcast %298 : vector<1x1x128xf32> to vector<2x16x128xf32>
      %300 = arith.mulf %297, %299 : vector<2x16x128xf32>
      %301 = vector.shape_cast %279 : vector<1x128xf32> to vector<1x1x128xf32>
      %302 = vector.broadcast %301 : vector<1x1x128xf32> to vector<2x16x128xf32>
      %303 = arith.addf %300, %302 : vector<2x16x128xf32>
      %c0_120 = arith.constant 0 : index
      %c0_121 = arith.constant 0 : index
      %c0_122 = arith.constant 0 : index
      %304 = vector.load %arg19[%c0_120, %c0_121, %c0_122] : memref<2x16x128xf32, #tpu.memory_space<vmem>>, vector<2x16x128xf32>
      tpu.vector_store %arg19[%c0_120, %c0_121, %c0_122], %303 {strides = array<i32>} : memref<2x16x128xf32, #tpu.memory_space<vmem>>, vector<2x16x128xf32>,
    } else {
    }
    %c0 = arith.constant 0 : index
    %c0_1 = arith.constant 0 : index
    %c0_2 = arith.constant 0 : index
    %3 = vector.load %arg19[%c0, %c0_1, %c0_2] : memref<2x16x128xf32, #tpu.memory_space<vmem>>, vector<2x16x128xf32>
    %4 = vector.shape_cast %3 : vector<2x16x128xf32> to vector<32x128xf32>
    %c0_3 = arith.constant 0 : index
    %c0_4 = arith.constant 0 : index
    %c0_5 = arith.constant 0 : index
    %5 = vector.load %arg7[%c0_3, %c0_4, %c0_5] : memref<1x1x128xf32, #tpu.memory_space<vmem>>, vector<1x1x128xf32>
    %6 = vector.shape_cast %5 : vector<1x1x128xf32> to vector<1x128xf32>
    %c0_6 = arith.constant 0 : index
    %c0_7 = arith.constant 0 : index
    %c0_8 = arith.constant 0 : index
    %7 = vector.load %arg8[%c0_6, %c0_7, %c0_8] : memref<1x1x128xf32, #tpu.memory_space<vmem>>, vector<1x1x128xf32>
    %8 = vector.shape_cast %7 : vector<1x1x128xf32> to vector<1x128xf32>
    %cst = arith.constant dense<0.000000e+00> : vector<32xf32>
    %9 = vector.multi_reduction <add>, %4, %cst [1] : vector<32x128xf32> to vector<32xf32>
    %10 = vector.shape_cast %9 : vector<32xf32> to vector<32x1xf32>
    %cst_9 = arith.constant 1.280000e+02 : f32
    %11 = vector.broadcast %cst_9 : f32 to vector<32x1xf32>
    %12 = arith.divf %10, %11 : vector<32x1xf32>
    %13 = vector.broadcast %12 : vector<32x1xf32> to vector<32x128xf32>
    %14 = arith.subf %4, %13 : vector<32x128xf32>
    %15 = arith.mulf %14, %14 : vector<32x128xf32>
    %cst_10 = arith.constant dense<0.000000e+00> : vector<32xf32>
    %16 = vector.multi_reduction <add>, %15, %cst_10 [1] : vector<32x128xf32> to vector<32xf32>
    %17 = vector.shape_cast %16 : vector<32xf32> to vector<32x1xf32>
    %cst_11 = arith.constant 1.280000e+02 : f32
    %18 = vector.broadcast %cst_11 : f32 to vector<32x1xf32>
    %19 = arith.divf %17, %18 : vector<32x1xf32>
    %20 = vector.broadcast %12 : vector<32x1xf32> to vector<32x128xf32>
    %21 = arith.subf %4, %20 : vector<32x128xf32>
    %cst_12 = arith.constant 9.99999974E-6 : f32
    %22 = vector.broadcast %cst_12 : f32 to vector<32x1xf32>
    %23 = arith.addf %19, %22 : vector<32x1xf32>
    %24 = math.rsqrt %23 : vector<32x1xf32>
    %25 = vector.broadcast %24 : vector<32x1xf32> to vector<32x128xf32>
    %26 = arith.mulf %21, %25 : vector<32x128xf32>
    %27 = vector.broadcast %6 : vector<1x128xf32> to vector<32x128xf32>
    %28 = arith.mulf %26, %27 : vector<32x128xf32>
    %29 = vector.broadcast %8 : vector<1x128xf32> to vector<32x128xf32>
    %30 = arith.addf %28, %29 : vector<32x128xf32>
    %31 = arith.truncf %30 : vector<32x128xf32> to vector<32x128xbf16>
    %c0_13 = arith.constant 0 : index
    %c0_14 = arith.constant 0 : index
    %c0_15 = arith.constant 0 : index
    %32 = vector.load %arg9[%c0_13, %c0_14, %c0_15] : memref<1x128x384xbf16, #tpu.memory_space<vmem>>, vector<1x128x384xbf16>
    %33 = vector.shape_cast %32 : vector<1x128x384xbf16> to vector<128x384xbf16>
    %cst_16 = arith.constant dense<0.000000e+00> : vector<32x384xf32>
    %34 = tpu.matmul %31, %33, %cst_16 {dimension_numbers = #tpu.dot_dimension_numbers<[1], [0], [0], [1], [0, 0, 1, 1], [], []>} : vector<32x128xbf16>, vector<128x384xbf16>, vector<32x384xf32> -> vector<32x384xf32>
    %c0_17 = arith.constant 0 : index
    %c0_18 = arith.constant 0 : index
    %c0_19 = arith.constant 0 : index
    %35 = vector.load %arg10[%c0_17, %c0_18, %c0_19] : memref<1x1x384xf32, #tpu.memory_space<vmem>>, vector<1x1x384xf32>
    %36 = vector.shape_cast %35 : vector<1x1x384xf32> to vector<1x384xf32>
    %37 = vector.broadcast %36 : vector<1x384xf32> to vector<32x384xf32>
    %38 = arith.addf %34, %37 : vector<32x384xf32>
    %39 = vector.extract_strided_slice %38 {offsets = [0, 0], sizes = [16, 32], strides = [1, 1]} : vector<32x384xf32> to vector<16x32xf32>
    %40 = arith.truncf %39 : vector<16x32xf32> to vector<16x32xbf16>
    %41 = vector.extract_strided_slice %38 {offsets = [0, 128], sizes = [16, 32], strides = [1, 1]} : vector<32x384xf32> to vector<16x32xf32>
    %42 = arith.truncf %41 : vector<16x32xf32> to vector<16x32xbf16>
    %43 = vector.extract_strided_slice %38 {offsets = [0, 256], sizes = [16, 32], strides = [1, 1]} : vector<32x384xf32> to vector<16x32xf32>
    %44 = arith.truncf %43 : vector<16x32xf32> to vector<16x32xbf16>
    %cst_20 = arith.constant dense<0.000000e+00> : vector<16x16xf32>
    %45 = tpu.matmul %40, %42, %cst_20 {dimension_numbers = #tpu.dot_dimension_numbers<[1], [1], [0], [0], [0, 0, 1, 0], [], []>} : vector<16x32xbf16>, vector<16x32xbf16>, vector<16x16xf32> -> vector<16x16xf32>
    %cst_21 = arith.constant dense<0xFF800000> : vector<16xf32>
    %46 = vector.multi_reduction <maximumf>, %45, %cst_21 [1] : vector<16x16xf32> to vector<16xf32>
    %47 = vector.shape_cast %46 : vector<16xf32> to vector<16x1xf32>
    %48 = vector.broadcast %47 : vector<16x1xf32> to vector<16x16xf32>
    %49 = arith.subf %45, %48 : vector<16x16xf32>
    %50 = math.exp %49 : vector<16x16xf32>
    %cst_22 = arith.constant dense<0.000000e+00> : vector<16xf32>
    %51 = vector.multi_reduction <add>, %50, %cst_22 [1] : vector<16x16xf32> to vector<16xf32>
    %52 = vector.shape_cast %51 : vector<16xf32> to vector<16x1xf32>
    %53 = tpu.reciprocal %52 {approx = true} : vector<16x1xf32> -> vector<16x1xf32>
    %54 = vector.broadcast %53 : vector<16x1xf32> to vector<16x16xf32>
    %55 = arith.mulf %50, %54 : vector<16x16xf32>
    %56 = arith.truncf %55 : vector<16x16xf32> to vector<16x16xbf16>
    %cst_23 = arith.constant dense<0.000000e+00> : vector<16x32xf32>
    %57 = tpu.matmul %56, %44, %cst_23 {dimension_numbers = #tpu.dot_dimension_numbers<[1], [0], [0], [1], [0, 0, 1, 1], [], []>} : vector<16x16xbf16>, vector<16x32xbf16>, vector<16x32xf32> -> vector<16x32xf32>
    %58 = arith.truncf %57 : vector<16x32xf32> to vector<16x32xbf16>
    %c0_24 = arith.constant 0 : index
    %c0_25 = arith.constant 0 : index
    %59 = vector.load %arg20[%c0_24, %c0_25] : memref<32x128xbf16, #tpu.memory_space<vmem>>, vector<16x32xbf16>
    tpu.vector_store %arg20[%c0_24, %c0_25], %58 {strides = array<i32>} : memref<32x128xbf16, #tpu.memory_space<vmem>>, vector<16x32xbf16>,
    %60 = vector.extract_strided_slice %38 {offsets = [0, 32], sizes = [16, 32], strides = [1, 1]} : vector<32x384xf32> to vector<16x32xf32>
    %61 = arith.truncf %60 : vector<16x32xf32> to vector<16x32xbf16>
    %62 = vector.extract_strided_slice %38 {offsets = [0, 160], sizes = [16, 32], strides = [1, 1]} : vector<32x384xf32> to vector<16x32xf32>
    %63 = arith.truncf %62 : vector<16x32xf32> to vector<16x32xbf16>
    %64 = vector.extract_strided_slice %38 {offsets = [0, 288], sizes = [16, 32], strides = [1, 1]} : vector<32x384xf32> to vector<16x32xf32>
    %65 = arith.truncf %64 : vector<16x32xf32> to vector<16x32xbf16>
    %cst_26 = arith.constant dense<0.000000e+00> : vector<16x16xf32>
    %66 = tpu.matmul %61, %63, %cst_26 {dimension_numbers = #tpu.dot_dimension_numbers<[1], [1], [0], [0], [0, 0, 1, 0], [], []>} : vector<16x32xbf16>, vector<16x32xbf16>, vector<16x16xf32> -> vector<16x16xf32>
    %cst_27 = arith.constant dense<0xFF800000> : vector<16xf32>
    %67 = vector.multi_reduction <maximumf>, %66, %cst_27 [1] : vector<16x16xf32> to vector<16xf32>
    %68 = vector.shape_cast %67 : vector<16xf32> to vector<16x1xf32>
    %69 = vector.broadcast %68 : vector<16x1xf32> to vector<16x16xf32>
    %70 = arith.subf %66, %69 : vector<16x16xf32>
    %71 = math.exp %70 : vector<16x16xf32>
    %cst_28 = arith.constant dense<0.000000e+00> : vector<16xf32>
    %72 = vector.multi_reduction <add>, %71, %cst_28 [1] : vector<16x16xf32> to vector<16xf32>
    %73 = vector.shape_cast %72 : vector<16xf32> to vector<16x1xf32>
    %74 = tpu.reciprocal %73 {approx = true} : vector<16x1xf32> -> vector<16x1xf32>
    %75 = vector.broadcast %74 : vector<16x1xf32> to vector<16x16xf32>
    %76 = arith.mulf %71, %75 : vector<16x16xf32>
    %77 = arith.truncf %76 : vector<16x16xf32> to vector<16x16xbf16>
    %cst_29 = arith.constant dense<0.000000e+00> : vector<16x32xf32>
    %78 = tpu.matmul %77, %65, %cst_29 {dimension_numbers = #tpu.dot_dimension_numbers<[1], [0], [0], [1], [0, 0, 1, 1], [], []>} : vector<16x16xbf16>, vector<16x32xbf16>, vector<16x32xf32> -> vector<16x32xf32>
    %79 = arith.truncf %78 : vector<16x32xf32> to vector<16x32xbf16>
    %c0_30 = arith.constant 0 : index
    %c32 = arith.constant 32 : index
    %80 = vector.load %arg20[%c0_30, %c32] : memref<32x128xbf16, #tpu.memory_space<vmem>>, vector<16x32xbf16>
    tpu.vector_store %arg20[%c0_30, %c32], %79 {strides = array<i32>} : memref<32x128xbf16, #tpu.memory_space<vmem>>, vector<16x32xbf16>,
    %81 = vector.extract_strided_slice %38 {offsets = [0, 64], sizes = [16, 32], strides = [1, 1]} : vector<32x384xf32> to vector<16x32xf32>
    %82 = arith.truncf %81 : vector<16x32xf32> to vector<16x32xbf16>
    %83 = vector.extract_strided_slice %38 {offsets = [0, 192], sizes = [16, 32], strides = [1, 1]} : vector<32x384xf32> to vector<16x32xf32>
    %84 = arith.truncf %83 : vector<16x32xf32> to vector<16x32xbf16>
    %85 = vector.extract_strided_slice %38 {offsets = [0, 320], sizes = [16, 32], strides = [1, 1]} : vector<32x384xf32> to vector<16x32xf32>
    %86 = arith.truncf %85 : vector<16x32xf32> to vector<16x32xbf16>
    %cst_31 = arith.constant dense<0.000000e+00> : vector<16x16xf32>
    %87 = tpu.matmul %82, %84, %cst_31 {dimension_numbers = #tpu.dot_dimension_numbers<[1], [1], [0], [0], [0, 0, 1, 0], [], []>} : vector<16x32xbf16>, vector<16x32xbf16>, vector<16x16xf32> -> vector<16x16xf32>
    %cst_32 = arith.constant dense<0xFF800000> : vector<16xf32>
    %88 = vector.multi_reduction <maximumf>, %87, %cst_32 [1] : vector<16x16xf32> to vector<16xf32>
    %89 = vector.shape_cast %88 : vector<16xf32> to vector<16x1xf32>
    %90 = vector.broadcast %89 : vector<16x1xf32> to vector<16x16xf32>
    %91 = arith.subf %87, %90 : vector<16x16xf32>
    %92 = math.exp %91 : vector<16x16xf32>
    %cst_33 = arith.constant dense<0.000000e+00> : vector<16xf32>
    %93 = vector.multi_reduction <add>, %92, %cst_33 [1] : vector<16x16xf32> to vector<16xf32>
    %94 = vector.shape_cast %93 : vector<16xf32> to vector<16x1xf32>
    %95 = tpu.reciprocal %94 {approx = true} : vector<16x1xf32> -> vector<16x1xf32>
    %96 = vector.broadcast %95 : vector<16x1xf32> to vector<16x16xf32>
    %97 = arith.mulf %92, %96 : vector<16x16xf32>
    %98 = arith.truncf %97 : vector<16x16xf32> to vector<16x16xbf16>
    %cst_34 = arith.constant dense<0.000000e+00> : vector<16x32xf32>
    %99 = tpu.matmul %98, %86, %cst_34 {dimension_numbers = #tpu.dot_dimension_numbers<[1], [0], [0], [1], [0, 0, 1, 1], [], []>} : vector<16x16xbf16>, vector<16x32xbf16>, vector<16x32xf32> -> vector<16x32xf32>
    %100 = arith.truncf %99 : vector<16x32xf32> to vector<16x32xbf16>
    %c0_35 = arith.constant 0 : index
    %c64 = arith.constant 64 : index
    %101 = vector.load %arg20[%c0_35, %c64] : memref<32x128xbf16, #tpu.memory_space<vmem>>, vector<16x32xbf16>
    tpu.vector_store %arg20[%c0_35, %c64], %100 {strides = array<i32>} : memref<32x128xbf16, #tpu.memory_space<vmem>>, vector<16x32xbf16>,
    %102 = vector.extract_strided_slice %38 {offsets = [0, 96], sizes = [16, 32], strides = [1, 1]} : vector<32x384xf32> to vector<16x32xf32>
    %103 = arith.truncf %102 : vector<16x32xf32> to vector<16x32xbf16>
    %104 = vector.extract_strided_slice %38 {offsets = [0, 224], sizes = [16, 32], strides = [1, 1]} : vector<32x384xf32> to vector<16x32xf32>
    %105 = arith.truncf %104 : vector<16x32xf32> to vector<16x32xbf16>
    %106 = vector.extract_strided_slice %38 {offsets = [0, 352], sizes = [16, 32], strides = [1, 1]} : vector<32x384xf32> to vector<16x32xf32>
    %107 = arith.truncf %106 : vector<16x32xf32> to vector<16x32xbf16>
    %cst_36 = arith.constant dense<0.000000e+00> : vector<16x16xf32>
    %108 = tpu.matmul %103, %105, %cst_36 {dimension_numbers = #tpu.dot_dimension_numbers<[1], [1], [0], [0], [0, 0, 1, 0], [], []>} : vector<16x32xbf16>, vector<16x32xbf16>, vector<16x16xf32> -> vector<16x16xf32>
    %cst_37 = arith.constant dense<0xFF800000> : vector<16xf32>
    %109 = vector.multi_reduction <maximumf>, %108, %cst_37 [1] : vector<16x16xf32> to vector<16xf32>
    %110 = vector.shape_cast %109 : vector<16xf32> to vector<16x1xf32>
    %111 = vector.broadcast %110 : vector<16x1xf32> to vector<16x16xf32>
    %112 = arith.subf %108, %111 : vector<16x16xf32>
    %113 = math.exp %112 : vector<16x16xf32>
    %cst_38 = arith.constant dense<0.000000e+00> : vector<16xf32>
    %114 = vector.multi_reduction <add>, %113, %cst_38 [1] : vector<16x16xf32> to vector<16xf32>
    %115 = vector.shape_cast %114 : vector<16xf32> to vector<16x1xf32>
    %116 = tpu.reciprocal %115 {approx = true} : vector<16x1xf32> -> vector<16x1xf32>
    %117 = vector.broadcast %116 : vector<16x1xf32> to vector<16x16xf32>
    %118 = arith.mulf %113, %117 : vector<16x16xf32>
    %119 = arith.truncf %118 : vector<16x16xf32> to vector<16x16xbf16>
    %cst_39 = arith.constant dense<0.000000e+00> : vector<16x32xf32>
    %120 = tpu.matmul %119, %107, %cst_39 {dimension_numbers = #tpu.dot_dimension_numbers<[1], [0], [0], [1], [0, 0, 1, 1], [], []>} : vector<16x16xbf16>, vector<16x32xbf16>, vector<16x32xf32> -> vector<16x32xf32>
    %121 = arith.truncf %120 : vector<16x32xf32> to vector<16x32xbf16>
    %c0_40 = arith.constant 0 : index
    %c96 = arith.constant 96 : index
    %122 = vector.load %arg20[%c0_40, %c96] : memref<32x128xbf16, #tpu.memory_space<vmem>>, vector<16x32xbf16>
    tpu.vector_store %arg20[%c0_40, %c96], %121 {strides = array<i32>} : memref<32x128xbf16, #tpu.memory_space<vmem>>, vector<16x32xbf16>,
    %123 = vector.extract_strided_slice %38 {offsets = [16, 0], sizes = [16, 32], strides = [1, 1]} : vector<32x384xf32> to vector<16x32xf32>
    %124 = arith.truncf %123 : vector<16x32xf32> to vector<16x32xbf16>
    %125 = vector.extract_strided_slice %38 {offsets = [16, 128], sizes = [16, 32], strides = [1, 1]} : vector<32x384xf32> to vector<16x32xf32>
    %126 = arith.truncf %125 : vector<16x32xf32> to vector<16x32xbf16>
    %127 = vector.extract_strided_slice %38 {offsets = [16, 256], sizes = [16, 32], strides = [1, 1]} : vector<32x384xf32> to vector<16x32xf32>
    %128 = arith.truncf %127 : vector<16x32xf32> to vector<16x32xbf16>
    %cst_41 = arith.constant dense<0.000000e+00> : vector<16x16xf32>
    %129 = tpu.matmul %124, %126, %cst_41 {dimension_numbers = #tpu.dot_dimension_numbers<[1], [1], [0], [0], [0, 0, 1, 0], [], []>} : vector<16x32xbf16>, vector<16x32xbf16>, vector<16x16xf32> -> vector<16x16xf32>
    %cst_42 = arith.constant dense<0xFF800000> : vector<16xf32>
    %130 = vector.multi_reduction <maximumf>, %129, %cst_42 [1] : vector<16x16xf32> to vector<16xf32>
    %131 = vector.shape_cast %130 : vector<16xf32> to vector<16x1xf32>
    %132 = vector.broadcast %131 : vector<16x1xf32> to vector<16x16xf32>
    %133 = arith.subf %129, %132 : vector<16x16xf32>
    %134 = math.exp %133 : vector<16x16xf32>
    %cst_43 = arith.constant dense<0.000000e+00> : vector<16xf32>
    %135 = vector.multi_reduction <add>, %134, %cst_43 [1] : vector<16x16xf32> to vector<16xf32>
    %136 = vector.shape_cast %135 : vector<16xf32> to vector<16x1xf32>
    %137 = tpu.reciprocal %136 {approx = true} : vector<16x1xf32> -> vector<16x1xf32>
    %138 = vector.broadcast %137 : vector<16x1xf32> to vector<16x16xf32>
    %139 = arith.mulf %134, %138 : vector<16x16xf32>
    %140 = arith.truncf %139 : vector<16x16xf32> to vector<16x16xbf16>
    %cst_44 = arith.constant dense<0.000000e+00> : vector<16x32xf32>
    %141 = tpu.matmul %140, %128, %cst_44 {dimension_numbers = #tpu.dot_dimension_numbers<[1], [0], [0], [1], [0, 0, 1, 1], [], []>} : vector<16x16xbf16>, vector<16x32xbf16>, vector<16x32xf32> -> vector<16x32xf32>
    %142 = arith.truncf %141 : vector<16x32xf32> to vector<16x32xbf16>
    %c16 = arith.constant 16 : index
    %c0_45 = arith.constant 0 : index
    %143 = vector.load %arg20[%c16, %c0_45] : memref<32x128xbf16, #tpu.memory_space<vmem>>, vector<16x32xbf16>
    tpu.vector_store %arg20[%c16, %c0_45], %142 {strides = array<i32>} : memref<32x128xbf16, #tpu.memory_space<vmem>>, vector<16x32xbf16>,
    %144 = vector.extract_strided_slice %38 {offsets = [16, 32], sizes = [16, 32], strides = [1, 1]} : vector<32x384xf32> to vector<16x32xf32>
    %145 = arith.truncf %144 : vector<16x32xf32> to vector<16x32xbf16>
    %146 = vector.extract_strided_slice %38 {offsets = [16, 160], sizes = [16, 32], strides = [1, 1]} : vector<32x384xf32> to vector<16x32xf32>
    %147 = arith.truncf %146 : vector<16x32xf32> to vector<16x32xbf16>
    %148 = vector.extract_strided_slice %38 {offsets = [16, 288], sizes = [16, 32], strides = [1, 1]} : vector<32x384xf32> to vector<16x32xf32>
    %149 = arith.truncf %148 : vector<16x32xf32> to vector<16x32xbf16>
    %cst_46 = arith.constant dense<0.000000e+00> : vector<16x16xf32>
    %150 = tpu.matmul %145, %147, %cst_46 {dimension_numbers = #tpu.dot_dimension_numbers<[1], [1], [0], [0], [0, 0, 1, 0], [], []>} : vector<16x32xbf16>, vector<16x32xbf16>, vector<16x16xf32> -> vector<16x16xf32>
    %cst_47 = arith.constant dense<0xFF800000> : vector<16xf32>
    %151 = vector.multi_reduction <maximumf>, %150, %cst_47 [1] : vector<16x16xf32> to vector<16xf32>
    %152 = vector.shape_cast %151 : vector<16xf32> to vector<16x1xf32>
    %153 = vector.broadcast %152 : vector<16x1xf32> to vector<16x16xf32>
    %154 = arith.subf %150, %153 : vector<16x16xf32>
    %155 = math.exp %154 : vector<16x16xf32>
    %cst_48 = arith.constant dense<0.000000e+00> : vector<16xf32>
    %156 = vector.multi_reduction <add>, %155, %cst_48 [1] : vector<16x16xf32> to vector<16xf32>
    %157 = vector.shape_cast %156 : vector<16xf32> to vector<16x1xf32>
    %158 = tpu.reciprocal %157 {approx = true} : vector<16x1xf32> -> vector<16x1xf32>
    %159 = vector.broadcast %158 : vector<16x1xf32> to vector<16x16xf32>
    %160 = arith.mulf %155, %159 : vector<16x16xf32>
    %161 = arith.truncf %160 : vector<16x16xf32> to vector<16x16xbf16>
    %cst_49 = arith.constant dense<0.000000e+00> : vector<16x32xf32>
    %162 = tpu.matmul %161, %149, %cst_49 {dimension_numbers = #tpu.dot_dimension_numbers<[1], [0], [0], [1], [0, 0, 1, 1], [], []>} : vector<16x16xbf16>, vector<16x32xbf16>, vector<16x32xf32> -> vector<16x32xf32>
    %163 = arith.truncf %162 : vector<16x32xf32> to vector<16x32xbf16>
    %c16_50 = arith.constant 16 : index
    %c32_51 = arith.constant 32 : index
    %164 = vector.load %arg20[%c16_50, %c32_51] : memref<32x128xbf16, #tpu.memory_space<vmem>>, vector<16x32xbf16>
    tpu.vector_store %arg20[%c16_50, %c32_51], %163 {strides = array<i32>} : memref<32x128xbf16, #tpu.memory_space<vmem>>, vector<16x32xbf16>,
    %165 = vector.extract_strided_slice %38 {offsets = [16, 64], sizes = [16, 32], strides = [1, 1]} : vector<32x384xf32> to vector<16x32xf32>
    %166 = arith.truncf %165 : vector<16x32xf32> to vector<16x32xbf16>
    %167 = vector.extract_strided_slice %38 {offsets = [16, 192], sizes = [16, 32], strides = [1, 1]} : vector<32x384xf32> to vector<16x32xf32>
    %168 = arith.truncf %167 : vector<16x32xf32> to vector<16x32xbf16>
    %169 = vector.extract_strided_slice %38 {offsets = [16, 320], sizes = [16, 32], strides = [1, 1]} : vector<32x384xf32> to vector<16x32xf32>
    %170 = arith.truncf %169 : vector<16x32xf32> to vector<16x32xbf16>
    %cst_52 = arith.constant dense<0.000000e+00> : vector<16x16xf32>
    %171 = tpu.matmul %166, %168, %cst_52 {dimension_numbers = #tpu.dot_dimension_numbers<[1], [1], [0], [0], [0, 0, 1, 0], [], []>} : vector<16x32xbf16>, vector<16x32xbf16>, vector<16x16xf32> -> vector<16x16xf32>
    %cst_53 = arith.constant dense<0xFF800000> : vector<16xf32>
    %172 = vector.multi_reduction <maximumf>, %171, %cst_53 [1] : vector<16x16xf32> to vector<16xf32>
    %173 = vector.shape_cast %172 : vector<16xf32> to vector<16x1xf32>
    %174 = vector.broadcast %173 : vector<16x1xf32> to vector<16x16xf32>
    %175 = arith.subf %171, %174 : vector<16x16xf32>
    %176 = math.exp %175 : vector<16x16xf32>
    %cst_54 = arith.constant dense<0.000000e+00> : vector<16xf32>
    %177 = vector.multi_reduction <add>, %176, %cst_54 [1] : vector<16x16xf32> to vector<16xf32>
    %178 = vector.shape_cast %177 : vector<16xf32> to vector<16x1xf32>
    %179 = tpu.reciprocal %178 {approx = true} : vector<16x1xf32> -> vector<16x1xf32>
    %180 = vector.broadcast %179 : vector<16x1xf32> to vector<16x16xf32>
    %181 = arith.mulf %176, %180 : vector<16x16xf32>
    %182 = arith.truncf %181 : vector<16x16xf32> to vector<16x16xbf16>
    %cst_55 = arith.constant dense<0.000000e+00> : vector<16x32xf32>
    %183 = tpu.matmul %182, %170, %cst_55 {dimension_numbers = #tpu.dot_dimension_numbers<[1], [0], [0], [1], [0, 0, 1, 1], [], []>} : vector<16x16xbf16>, vector<16x32xbf16>, vector<16x32xf32> -> vector<16x32xf32>
    %184 = arith.truncf %183 : vector<16x32xf32> to vector<16x32xbf16>
    %c16_56 = arith.constant 16 : index
    %c64_57 = arith.constant 64 : index
    %185 = vector.load %arg20[%c16_56, %c64_57] : memref<32x128xbf16, #tpu.memory_space<vmem>>, vector<16x32xbf16>
    tpu.vector_store %arg20[%c16_56, %c64_57], %184 {strides = array<i32>} : memref<32x128xbf16, #tpu.memory_space<vmem>>, vector<16x32xbf16>,
    %186 = vector.extract_strided_slice %38 {offsets = [16, 96], sizes = [16, 32], strides = [1, 1]} : vector<32x384xf32> to vector<16x32xf32>
    %187 = arith.truncf %186 : vector<16x32xf32> to vector<16x32xbf16>
    %188 = vector.extract_strided_slice %38 {offsets = [16, 224], sizes = [16, 32], strides = [1, 1]} : vector<32x384xf32> to vector<16x32xf32>
    %189 = arith.truncf %188 : vector<16x32xf32> to vector<16x32xbf16>
    %190 = vector.extract_strided_slice %38 {offsets = [16, 352], sizes = [16, 32], strides = [1, 1]} : vector<32x384xf32> to vector<16x32xf32>
    %191 = arith.truncf %190 : vector<16x32xf32> to vector<16x32xbf16>
    %cst_58 = arith.constant dense<0.000000e+00> : vector<16x16xf32>
    %192 = tpu.matmul %187, %189, %cst_58 {dimension_numbers = #tpu.dot_dimension_numbers<[1], [1], [0], [0], [0, 0, 1, 0], [], []>} : vector<16x32xbf16>, vector<16x32xbf16>, vector<16x16xf32> -> vector<16x16xf32>
    %cst_59 = arith.constant dense<0xFF800000> : vector<16xf32>
    %193 = vector.multi_reduction <maximumf>, %192, %cst_59 [1] : vector<16x16xf32> to vector<16xf32>
    %194 = vector.shape_cast %193 : vector<16xf32> to vector<16x1xf32>
    %195 = vector.broadcast %194 : vector<16x1xf32> to vector<16x16xf32>
    %196 = arith.subf %192, %195 : vector<16x16xf32>
    %197 = math.exp %196 : vector<16x16xf32>
    %cst_60 = arith.constant dense<0.000000e+00> : vector<16xf32>
    %198 = vector.multi_reduction <add>, %197, %cst_60 [1] : vector<16x16xf32> to vector<16xf32>
    %199 = vector.shape_cast %198 : vector<16xf32> to vector<16x1xf32>
    %200 = tpu.reciprocal %199 {approx = true} : vector<16x1xf32> -> vector<16x1xf32>
    %201 = vector.broadcast %200 : vector<16x1xf32> to vector<16x16xf32>
    %202 = arith.mulf %197, %201 : vector<16x16xf32>
    %203 = arith.truncf %202 : vector<16x16xf32> to vector<16x16xbf16>
    %cst_61 = arith.constant dense<0.000000e+00> : vector<16x32xf32>
    %204 = tpu.matmul %203, %191, %cst_61 {dimension_numbers = #tpu.dot_dimension_numbers<[1], [0], [0], [1], [0, 0, 1, 1], [], []>} : vector<16x16xbf16>, vector<16x32xbf16>, vector<16x32xf32> -> vector<16x32xf32>
    %205 = arith.truncf %204 : vector<16x32xf32> to vector<16x32xbf16>
    %c16_62 = arith.constant 16 : index
    %c96_63 = arith.constant 96 : index
    %206 = vector.load %arg20[%c16_62, %c96_63] : memref<32x128xbf16, #tpu.memory_space<vmem>>, vector<16x32xbf16>
    tpu.vector_store %arg20[%c16_62, %c96_63], %205 {strides = array<i32>} : memref<32x128xbf16, #tpu.memory_space<vmem>>, vector<16x32xbf16>,
    %c0_64 = arith.constant 0 : index
    %c0_65 = arith.constant 0 : index
    %207 = vector.load %arg20[%c0_64, %c0_65] : memref<32x128xbf16, #tpu.memory_space<vmem>>, vector<32x128xbf16>
    %c0_66 = arith.constant 0 : index
    %c0_67 = arith.constant 0 : index
    %c0_68 = arith.constant 0 : index
    %208 = vector.load %arg11[%c0_66, %c0_67, %c0_68] : memref<1x128x128xbf16, #tpu.memory_space<vmem>>, vector<1x128x128xbf16>
    %209 = vector.shape_cast %208 : vector<1x128x128xbf16> to vector<128x128xbf16>
    %cst_69 = arith.constant dense<0.000000e+00> : vector<32x128xf32>
    %210 = tpu.matmul %207, %209, %cst_69 {dimension_numbers = #tpu.dot_dimension_numbers<[1], [0], [0], [1], [0, 0, 1, 1], [], []>} : vector<32x128xbf16>, vector<128x128xbf16>, vector<32x128xf32> -> vector<32x128xf32>
    %c0_70 = arith.constant 0 : index
    %c0_71 = arith.constant 0 : index
    %c0_72 = arith.constant 0 : index
    %211 = vector.load %arg12[%c0_70, %c0_71, %c0_72] : memref<1x1x128xf32, #tpu.memory_space<vmem>>, vector<1x1x128xf32>
    %212 = vector.shape_cast %211 : vector<1x1x128xf32> to vector<1x128xf32>
    %213 = vector.broadcast %212 : vector<1x128xf32> to vector<32x128xf32>
    %214 = arith.addf %210, %213 : vector<32x128xf32>
    %215 = arith.addf %4, %214 : vector<32x128xf32>
    %c0_73 = arith.constant 0 : index
    %c0_74 = arith.constant 0 : index
    %c0_75 = arith.constant 0 : index
    %216 = vector.load %arg13[%c0_73, %c0_74, %c0_75] : memref<1x1x128xf32, #tpu.memory_space<vmem>>, vector<1x1x128xf32>
    %217 = vector.shape_cast %216 : vector<1x1x128xf32> to vector<1x128xf32>
    %c0_76 = arith.constant 0 : index
    %c0_77 = arith.constant 0 : index
    %c0_78 = arith.constant 0 : index
    %218 = vector.load %arg14[%c0_76, %c0_77, %c0_78] : memref<1x1x128xf32, #tpu.memory_space<vmem>>, vector<1x1x128xf32>
    %219 = vector.shape_cast %218 : vector<1x1x128xf32> to vector<1x128xf32>
    %cst_79 = arith.constant dense<0.000000e+00> : vector<32xf32>
    %220 = vector.multi_reduction <add>, %215, %cst_79 [1] : vector<32x128xf32> to vector<32xf32>
    %221 = vector.shape_cast %220 : vector<32xf32> to vector<32x1xf32>
    %cst_80 = arith.constant 1.280000e+02 : f32
    %222 = vector.broadcast %cst_80 : f32 to vector<32x1xf32>
    %223 = arith.divf %221, %222 : vector<32x1xf32>
    %224 = vector.broadcast %223 : vector<32x1xf32> to vector<32x128xf32>
    %225 = arith.subf %215, %224 : vector<32x128xf32>
    %226 = arith.mulf %225, %225 : vector<32x128xf32>
    %cst_81 = arith.constant dense<0.000000e+00> : vector<32xf32>
    %227 = vector.multi_reduction <add>, %226, %cst_81 [1] : vector<32x128xf32> to vector<32xf32>
    %228 = vector.shape_cast %227 : vector<32xf32> to vector<32x1xf32>
    %cst_82 = arith.constant 1.280000e+02 : f32
    %229 = vector.broadcast %cst_82 : f32 to vector<32x1xf32>
    %230 = arith.divf %228, %229 : vector<32x1xf32>
    %231 = vector.broadcast %223 : vector<32x1xf32> to vector<32x128xf32>
    %232 = arith.subf %215, %231 : vector<32x128xf32>
    %cst_83 = arith.constant 9.99999974E-6 : f32
    %233 = vector.broadcast %cst_83 : f32 to vector<32x1xf32>
    %234 = arith.addf %230, %233 : vector<32x1xf32>
    %235 = math.rsqrt %234 : vector<32x1xf32>
    %236 = vector.broadcast %235 : vector<32x1xf32> to vector<32x128xf32>
    %237 = arith.mulf %232, %236 : vector<32x128xf32>
    %238 = vector.broadcast %217 : vector<1x128xf32> to vector<32x128xf32>
    %239 = arith.mulf %237, %238 : vector<32x128xf32>
    %240 = vector.broadcast %219 : vector<1x128xf32> to vector<32x128xf32>
    %241 = arith.addf %239, %240 : vector<32x128xf32>
    %242 = arith.truncf %241 : vector<32x128xf32> to vector<32x128xbf16>
    %c0_84 = arith.constant 0 : index
    %c0_85 = arith.constant 0 : index
    %c0_86 = arith.constant 0 : index
    %243 = vector.load %arg15[%c0_84, %c0_85, %c0_86] : memref<1x128x512xbf16, #tpu.memory_space<vmem>>, vector<1x128x512xbf16>
    %244 = vector.shape_cast %243 : vector<1x128x512xbf16> to vector<128x512xbf16>
    %cst_87 = arith.constant dense<0.000000e+00> : vector<32x512xf32>
    %245 = tpu.matmul %242, %244, %cst_87 {dimension_numbers = #tpu.dot_dimension_numbers<[1], [0], [0], [1], [0, 0, 1, 1], [], []>} : vector<32x128xbf16>, vector<128x512xbf16>, vector<32x512xf32> -> vector<32x512xf32>
    %c0_88 = arith.constant 0 : index
    %c0_89 = arith.constant 0 : index
    %c0_90 = arith.constant 0 : index
    %246 = vector.load %arg16[%c0_88, %c0_89, %c0_90] : memref<1x1x512xf32, #tpu.memory_space<vmem>>, vector<1x1x512xf32>
    %247 = vector.shape_cast %246 : vector<1x1x512xf32> to vector<1x512xf32>
    %248 = vector.broadcast %247 : vector<1x512xf32> to vector<32x512xf32>
    %249 = arith.addf %245, %248 : vector<32x512xf32>
    %cst_91 = arith.constant 1.702000e+00 : f32
    %250 = vector.broadcast %cst_91 : f32 to vector<32x512xf32>
    %251 = arith.mulf %250, %249 : vector<32x512xf32>
    %252 = arith.negf %251 : vector<32x512xf32>
    %253 = math.exp %252 : vector<32x512xf32>
    %cst_92 = arith.constant 1.000000e+00 : f32
    %254 = vector.broadcast %cst_92 : f32 to vector<32x512xf32>
    %255 = arith.addf %254, %253 : vector<32x512xf32>
    %256 = arith.divf %254, %255 : vector<32x512xf32>
    %257 = arith.mulf %249, %256 : vector<32x512xf32>
    %258 = arith.truncf %257 : vector<32x512xf32> to vector<32x512xbf16>
    %c0_93 = arith.constant 0 : index
    %c0_94 = arith.constant 0 : index
    %c0_95 = arith.constant 0 : index
    %259 = vector.load %arg17[%c0_93, %c0_94, %c0_95] : memref<1x512x128xbf16, #tpu.memory_space<vmem>>, vector<1x512x128xbf16>
    %260 = vector.shape_cast %259 : vector<1x512x128xbf16> to vector<512x128xbf16>
    %cst_96 = arith.constant dense<0.000000e+00> : vector<32x128xf32>
    %261 = tpu.matmul %258, %260, %cst_96 {dimension_numbers = #tpu.dot_dimension_numbers<[1], [0], [0], [1], [0, 0, 1, 1], [], []>} : vector<32x512xbf16>, vector<512x128xbf16>, vector<32x128xf32> -> vector<32x128xf32>
    %c0_97 = arith.constant 0 : index
    %c0_98 = arith.constant 0 : index
    %c0_99 = arith.constant 0 : index
    %262 = vector.load %arg18[%c0_97, %c0_98, %c0_99] : memref<1x1x128xf32, #tpu.memory_space<vmem>>, vector<1x1x128xf32>
    %263 = vector.shape_cast %262 : vector<1x1x128xf32> to vector<1x128xf32>
    %264 = vector.broadcast %263 : vector<1x128xf32> to vector<32x128xf32>
    %265 = arith.addf %261, %264 : vector<32x128xf32>
    %266 = arith.addf %215, %265 : vector<32x128xf32>
    %267 = vector.shape_cast %266 : vector<32x128xf32> to vector<2x16x128xf32>
    %c0_100 = arith.constant 0 : index
    %c0_101 = arith.constant 0 : index
    %c0_102 = arith.constant 0 : index
    %268 = vector.load %arg19[%c0_100, %c0_101, %c0_102] : memref<2x16x128xf32, #tpu.memory_space<vmem>>, vector<2x16x128xf32>
    tpu.vector_store %arg19[%c0_100, %c0_101, %c0_102], %267 {strides = array<i32>} : memref<2x16x128xf32, #tpu.memory_space<vmem>>, vector<2x16x128xf32>,
    return
  }
  func.func @transform_0(%arg0: i32, %arg1: i32) -> (i32, i32, i32) {
    %c0_i32 = arith.constant 0 : i32
    %c0_i32_0 = arith.constant 0 : i32
    %c0_i32_1 = arith.constant 0 : i32
    return %arg0, %c0_i32, %c0_i32_0 : i32, i32, i32
  }
  func.func @transform_1(%arg0: i32, %arg1: i32) -> (i32, i32) {
    %c0_i32 = arith.constant 0 : i32
    %c0_i32_0 = arith.constant 0 : i32
    %c0_i32_1 = arith.constant 0 : i32
    return %c0_i32, %c0_i32_0 : i32, i32
  }
  func.func @transform_2(%arg0: i32, %arg1: i32) -> (i32, i32) {
    %c0_i32 = arith.constant 0 : i32
    %c0_i32_0 = arith.constant 0 : i32
    %c0_i32_1 = arith.constant 0 : i32
    return %c0_i32, %c0_i32_0 : i32, i32
  }
  func.func @transform_3(%arg0: i32, %arg1: i32) -> (i32, i32) {
    %c0_i32 = arith.constant 0 : i32
    %c0_i32_0 = arith.constant 0 : i32
    %c0_i32_1 = arith.constant 0 : i32
    return %c0_i32, %c0_i32_0 : i32, i32
  }
  func.func @transform_4(%arg0: i32, %arg1: i32) -> (i32, i32) {
    %c0_i32 = arith.constant 0 : i32
    %c0_i32_0 = arith.constant 0 : i32
    %c0_i32_1 = arith.constant 0 : i32
    return %c0_i32, %c0_i32_0 : i32, i32
  }
  func.func @transform_5(%arg0: i32, %arg1: i32) -> (i32, i32, i32) {
    %c0_i32 = arith.constant 0 : i32
    %c0_i32_0 = arith.constant 0 : i32
    %c0_i32_1 = arith.constant 0 : i32
    return %arg1, %c0_i32, %c0_i32_0 : i32, i32, i32
  }
  func.func @transform_6(%arg0: i32, %arg1: i32) -> (i32, i32, i32) {
    %c0_i32 = arith.constant 0 : i32
    %c0_i32_0 = arith.constant 0 : i32
    %c0_i32_1 = arith.constant 0 : i32
    return %arg1, %c0_i32, %c0_i32_0 : i32, i32, i32
  }
  func.func @transform_7(%arg0: i32, %arg1: i32) -> (i32, i32, i32) {
    %c0_i32 = arith.constant 0 : i32
    %c0_i32_0 = arith.constant 0 : i32
    %c0_i32_1 = arith.constant 0 : i32
    return %arg1, %c0_i32, %c0_i32_0 : i32, i32, i32
  }
  func.func @transform_8(%arg0: i32, %arg1: i32) -> (i32, i32, i32) {
    %c0_i32 = arith.constant 0 : i32
    %c0_i32_0 = arith.constant 0 : i32
    %c0_i32_1 = arith.constant 0 : i32
    return %arg1, %c0_i32, %c0_i32_0 : i32, i32, i32
  }
  func.func @transform_9(%arg0: i32, %arg1: i32) -> (i32, i32, i32) {
    %c0_i32 = arith.constant 0 : i32
    %c0_i32_0 = arith.constant 0 : i32
    %c0_i32_1 = arith.constant 0 : i32
    return %arg1, %c0_i32, %c0_i32_0 : i32, i32, i32
  }
  func.func @transform_10(%arg0: i32, %arg1: i32) -> (i32, i32, i32) {
    %c0_i32 = arith.constant 0 : i32
    %c0_i32_0 = arith.constant 0 : i32
    %c0_i32_1 = arith.constant 0 : i32
    return %arg1, %c0_i32, %c0_i32_0 : i32, i32, i32
  }
  func.func @transform_11(%arg0: i32, %arg1: i32) -> (i32, i32, i32) {
    %c0_i32 = arith.constant 0 : i32
    %c0_i32_0 = arith.constant 0 : i32
    %c0_i32_1 = arith.constant 0 : i32
    return %arg1, %c0_i32, %c0_i32_0 : i32, i32, i32
  }
  func.func @transform_12(%arg0: i32, %arg1: i32) -> (i32, i32, i32) {
    %c0_i32 = arith.constant 0 : i32
    %c0_i32_0 = arith.constant 0 : i32
    %c0_i32_1 = arith.constant 0 : i32
    return %arg1, %c0_i32, %c0_i32_0 : i32, i32, i32
  }
  func.func @transform_13(%arg0: i32, %arg1: i32) -> (i32, i32, i32) {
    %c0_i32 = arith.constant 0 : i32
    %c0_i32_0 = arith.constant 0 : i32
    %c0_i32_1 = arith.constant 0 : i32
    return %arg1, %c0_i32, %c0_i32_0 : i32, i32, i32
  }
  func.func @transform_14(%arg0: i32, %arg1: i32) -> (i32, i32, i32) {
    %c0_i32 = arith.constant 0 : i32
    %c0_i32_0 = arith.constant 0 : i32
    %c0_i32_1 = arith.constant 0 : i32
    return %arg1, %c0_i32, %c0_i32_0 : i32, i32, i32
  }
  func.func @transform_15(%arg0: i32, %arg1: i32) -> (i32, i32, i32) {
    %c0_i32 = arith.constant 0 : i32
    %c0_i32_0 = arith.constant 0 : i32
    %c0_i32_1 = arith.constant 0 : i32
    return %arg1, %c0_i32, %c0_i32_0 : i32, i32, i32
  }
  func.func @transform_16(%arg0: i32, %arg1: i32) -> (i32, i32, i32) {
    %c0_i32 = arith.constant 0 : i32
    %c0_i32_0 = arith.constant 0 : i32
    %c0_i32_1 = arith.constant 0 : i32
    return %arg1, %c0_i32, %c0_i32_0 : i32, i32, i32
  }
  func.func @transform_17(%arg0: i32, %arg1: i32) -> (i32, i32, i32) {
    %c0_i32 = arith.constant 0 : i32
    %c0_i32_0 = arith.constant 0 : i32
    %c0_i32_1 = arith.constant 0 : i32
    return %arg0, %c0_i32, %c0_i32_0 : i32, i32, i32
  }
}

</mosaic_0001>

<bundles_post_ra>
// kernel: vision_transformer_forward.1
= control target key start
LH: loop header
LB: loop body
LE: loop exit
PB: predicated region body
PF: predicated region fallthrough
CT: control target
= control target key end

     0   :  { %s5320_s0 = inlined_call_operand.vmem [shape: bf16[2,16,256], index: 0, kind: input, shape index: {}]   ;;  %s5321_s1 = inlined_call_operand.vmem [shape: bf16[256,128], index: 1, kind: input, shape index: {}]   ;;  %s5322_s2 = inlined_call_operand.vmem [shape: f32[16,128], index: 2, kind: input, shape index: {}]   ;;  %s5323_s3 = inlined_call_operand.vmem [shape: f32[1,128], index: 3, kind: input, shape index: {}]   ;;  %s5324_s4 = inlined_call_operand.vmem [shape: f32[1,128], index: 4, kind: input, shape index: {}]   ;;  %s5325_s5 = inlined_call_operand.vmem [shape: f32[2,1,128], index: 5, kind: input, shape index: {}]   ;;  %s5326_s6 = inlined_call_operand.vmem [shape: f32[2,1,128], index: 6, kind: input, shape index: {}]   ;;  %s5327_s7 = inlined_call_operand.vmem [shape: bf16[2,128,384], index: 7, kind: input, shape index: {}]   ;;  %s5328_s8 = inlined_call_operand.vmem [shape: f32[2,1,384], index: 8, kind: input, shape index: {}]   ;;  %s5329_s9 = inlined_call_operand.vmem [shape: bf16[2,128,128], index: 9, kind: input, shape index: {}]   ;;  %s5330_s10 = inlined_call_operand.vmem [shape: f32[2,1,128], index: 10, kind: input, shape index: {}]   ;;  %s5331_s11 = inlined_call_operand.vmem [shape: f32[2,1,128], index: 11, kind: input, shape index: {}]   ;;  %s5332_s12 = inlined_call_operand.vmem [shape: f32[2,1,128], index: 12, kind: input, shape index: {}]   ;;  %s5333_s13 = inlined_call_operand.vmem [shape: bf16[2,128,512], index: 13, kind: input, shape index: {}]   ;;  %s5334_s14 = inlined_call_operand.vmem [shape: f32[2,1,512], index: 14, kind: input, shape index: {}]   ;;  %s5335_s15 = inlined_call_operand.vmem [shape: bf16[2,512,128], index: 15, kind: input, shape index: {}]   ;;  %s5336_s16 = inlined_call_operand.vmem [shape: f32[2,1,128], index: 16, kind: input, shape index: {}]   ;;  %s5337_s17 = inlined_call_operand.hbm [shape: f32[2,16,128], index: 17, kind: output, shape index: {}]  }
   0x1   :  { %5343 = sst [smem:[#allocation9_spill]] %s5320_s0 }
   0x2   :  { %5344 = sst [smem:[#allocation10_spill]] %s5321_s1 }
   0x3   :  { %5345 = sst [smem:[#allocation11_spill]] %s5324_s4 }
   0x4   :  { %5346 = sst [smem:[#allocation12_spill]] %s5325_s5 }
   0x5   :  { %5347 = sst [smem:[#allocation13_spill]] %s5326_s6 }
   0x6   :  { %5348 = sst [smem:[#allocation14_spill]] %s5327_s7 }
   0x7   :  { %5349 = sst [smem:[#allocation15_spill]] %s5329_s9 }
   0x8   :  { %5350 = sst [smem:[#allocation16_spill]] %s5337_s17 }
   0x9   :  { %22 = vsyncpa [#allocation4], 0  ;;  %s4570_s24 = smov 0   ;;  %s4572_s25 = smov 0  }
   0xa   :  { %s4574_s26 = smov 0  }
   0xb LB: > { %5351 = sst [smem:[#allocation6_spill]] %s4465_s25  ;;  %s37_s28 = sadd.s32 1, %s4465_s25  ;;  %s4469_s26 = sphi %s4574_s26, %s28_s26   ;;  %s4465_s25 = sphi %s4572_s25, %s5374_s25   ;;  %s4461_s24 = sphi %s4570_s24, %s5373_s24  }
   0xc   : > { %5352 = sst [smem:[#allocation7_spill]] %s4469_s26  ;;  %p38_p0 = scmp.ge.s32.totalorder %s37_s28, 2 }
   0xd   : > { %p3617_p1 = scmp.ge.s32.totalorder %s4469_s26, 1  ;;  %p608_p2 = scmp.lt.s32.totalorder %s4469_s26, 3 }
   0xe   : > { %s5376_s28 = smov (%p38_p0, %s37_s28), 0 }
   0xf   : > { %5353 = sst [smem:[#allocation8_spill]] %s5376_s28  ;;  %p609_p3 = pnand %p3617_p1, %p608_p2 }
  0x10   : > { %p709_p4 = scmp.lt.s32.totalorder (!%p609_p3), %s4461_s24, 1  ;;  %s5356_s9 = sld [smem:[#allocation15_spill]] (!%p609_p3) }
  0x11   : > { %612 = sbr.rel (%p609_p3) target bundleno = 3270 (0xcc6), region = 88  ;;  %s5357_s7 = sld [smem:[#allocation14_spill]] (!%p609_p3) }
  0x12   : > { %p3626_p5 = scmp.ne.s32.totalorder (!%p609_p3), %s4461_s24, 0 }
  0x18   : > { %s4593_s29 = scalar_select %p709_p4, %s4461_s24, 1 }
  0x19   : > { %760 = sbr.rel (%p3626_p5) target bundleno = 608 (0x260), region = 92  ;;  %v962_v24 = vld [vmem:[%s5322_s2] sm:$0xff] (!%p3626_p5)  ;;  %v963_v31 = vld [vmem:[%s5322_s2 + $0x8] sm:$0xff] (!%p3626_p5)  ;;  %s5360_s5 = sld [smem:[#allocation11_spill]] (!%p3626_p5) }
  0x1a   : > { %s4078_s21 = smul.u32 192, %s4593_s29  ;;  %s3787_s22 = sshll.u32 %s4593_s29, 6 }
  0x1b   : > { %s4079_s23 = smul.u32 3, %s4593_s29  ;;  %s4609_s30 = scalar_lea.vmem %s5356_s9, %s3787_s22 }
  0x1c   : > { %s4614_s17 = scalar_lea.vmem %s5357_s7, %s4078_s21  ;;  %s3788_s25 = sshll.u32 %s4593_s29, 8 }
  0x1d   : > { %s4623_s20 = scalar_lea.vmem %s5328_s8, %s4079_s23  ;;  %s4637_s7 = scalar_lea.vmem %s5333_s13, %s3788_s25 }
  0x1e   : > { %s3623_s26 = sshll.u32 %s4593_s29, 2  ;;  %s4648_s4 = scalar_lea.vmem %s5335_s15, %s3788_s25 }
  0x1f   : > { %s4643_s23 = scalar_lea.vmem %s5334_s14, %s3623_s26  ;;  %s754_s0 = scalar_lea.vmem %s5336_s16, %s4593_s29 }
  0x20   : > { %s5358_s9 = sld [smem:[#allocation10_spill]]  ;;  %s5359_s22 = sld [smem:[#allocation9_spill]] }
  0x26   : > { %v4119_v0 = vld [vmem:[%s5358_s9 + $0x40] sm:$0xff]   ;;  %v4121_v2 = vld [vmem:[%s5358_s9 + $0x48] sm:$0xff]   ;;  %v4123_v4 = vld [vmem:[%s5358_s9 + $0x50] sm:$0xff]  }
  0x27   : > { %v4120_v1 = vld [vmem:[%s5358_s9] sm:$0xff]   ;;  %3790 = vmatprep.subr.bf16.mxu0 %v4119_v0  ;;  %4062 = vmatprep.subr.bf16.mxu1 %v4119_v0  ;;  %v4122_v3 = vld [vmem:[%s5358_s9 + $0x8] sm:$0xff]   ;;  %v4124_v5 = vld [vmem:[%s5358_s9 + $0x10] sm:$0xff]  }
  0x28   : > { %3791 = vmatpush3.bf16.msra.mxu0 %v4120_v1  ;;  %4070 = vmatpush3.bf16.msra.mxu1 %v4120_v1  ;;  %v4125_v6 = vld [vmem:[%s5358_s9 + $0x58] sm:$0xff]   ;;  %v4127_v8 = vld [vmem:[%s5358_s9 + $0x60] sm:$0xff]   ;;  %v4129_v10 = vld [vmem:[%s5358_s9 + $0x68] sm:$0xff]  }
  0x29   : > { %3792 = vmatprep.subr.bf16.mxu0 %v4121_v2  ;;  %4063 = vmatprep.subr.bf16.mxu1 %v4121_v2  ;;  %v4126_v7 = vld [vmem:[%s5358_s9 + $0x18] sm:$0xff]   ;;  %v4128_v9 = vld [vmem:[%s5358_s9 + $0x20] sm:$0xff]   ;;  %v4130_v13 = vld [vmem:[%s5358_s9 + $0x28] sm:$0xff]  }
  0x2a   : > { %v4137_v11 = vld [vmem:[%s5359_s22 + $0x4] ss:$8 sps:$4 sm:$0xff]   ;;  %v4140_v12 = vld [vmem:[%s5359_s22 + $0x14] ss:$8 sps:$4 sm:$0xff]   ;;  %v4135_v18 = vld [vmem:[%s5359_s22] ss:$8 sps:$4 sm:$0xff]  }
  0x2b   : > { %v4131_v14 = vld [vmem:[%s5358_s9 + $0x70] sm:$0xff]   ;;  %945 = vmatprep.mubr.bf16.mxu0 %v4137_v11  ;;  %953 = vmatprep.mubr.bf16.mxu1 %v4140_v12  ;;  %v4133_v16 = vld [vmem:[%s5358_s9 + $0x78] sm:$0xff]  }
  0x2c   : > { %3793 = vmatpush3.bf16.msra.mxu0 %v4122_v3  ;;  %4071 = vmatpush3.bf16.msra.mxu1 %v4122_v3  ;;  %v4132_v15 = vld [vmem:[%s5358_s9 + $0x30] sm:$0xff]   ;;  %v4134_v17 = vld [vmem:[%s5358_s9 + $0x38] sm:$0xff]   ;;  %v3647_v3 = vld [vmem:[%s5323_s3] ss:$0 sm:$0xff] }
  0x2d   : > { %3794 = vmatprep.subr.bf16.mxu0 %v4123_v4  ;;  %4064 = vmatprep.subr.bf16.mxu1 %v4123_v4  ;;  %v4138_v19 = vld [vmem:[%s5359_s22 + $0x10] ss:$8 sps:$4 sm:$0xff]  }
  0x30   : > { %3795 = vmatpush3.bf16.msra.mxu0 %v4124_v5  ;;  %4072 = vmatpush3.bf16.msra.mxu1 %v4124_v5  ;;  %v3648_v5 = vld [vmem:[%s5360_s5] ss:$0 sm:$0xff] }
  0x31   : > { %3796 = vmatprep.subr.bf16.mxu0 %v4125_v6  ;;  %4065 = vmatprep.subr.bf16.mxu1 %v4125_v6 }
  0x34   : > { %3797 = vmatpush3.bf16.msra.mxu0 %v4126_v7  ;;  %4073 = vmatpush3.bf16.msra.mxu1 %v4126_v7 }
  0x35   : > { %3798 = vmatprep.subr.bf16.mxu0 %v4127_v8  ;;  %4066 = vmatprep.subr.bf16.mxu1 %v4127_v8 }
  0x38   : > { %3799 = vmatpush3.bf16.msra.mxu0 %v4128_v9  ;;  %4074 = vmatpush3.bf16.msra.mxu1 %v4128_v9 }
  0x39   : > { %3800 = vmatprep.subr.bf16.mxu0 %v4129_v10  ;;  %4067 = vmatprep.subr.bf16.mxu1 %v4129_v10 }
  0x3c   : > { %3801 = vmatpush3.bf16.msra.mxu0 %v4130_v13  ;;  %4075 = vmatpush3.bf16.msra.mxu1 %v4130_v13 }
  0x3d   : > { %3802 = vmatprep.subr.bf16.mxu0 %v4131_v14  ;;  %4068 = vmatprep.subr.bf16.mxu1 %v4131_v14 }
  0x40   : > { %3803 = vmatpush3.bf16.msra.mxu0 %v4132_v15  ;;  %4076 = vmatpush3.bf16.msra.mxu1 %v4132_v15 }
  0x41   : > { %3804 = vmatprep.subr.bf16.mxu0 %v4133_v16  ;;  %4069 = vmatprep.subr.bf16.mxu1 %v4133_v16 }
  0x44   : > { %3805 = vmatpush3.bf16.msra.mxu0 %v4134_v17  ;;  %4077 = vmatpush3.bf16.msra.mxu1 %v4134_v17 }
  0x47   : > { %946 = vmatmul.mubr.bf16.vlgmr.msra.gmra.mrb[0].mxu0 %v4135_v18  ;;  %954 = vmatmul.mubr.bf16.vlgmr.msra.gmra.mrb[0].mxu1 %v4138_v19 }
 0x11a   : > { %v3806_v20 = vpop.f32.mrb[0].mxu0  ;;  %v3812_v21 = vpop.f32.mrb[0].mxu1 }
 0x11b   : > { %v3807_v22 = vpop.f32.mrb[1].mxu0  ;;  %v3813_v23 = vpop.f32.mrb[1].mxu1 }
 0x11c   : > { %v3808_v25 = vadd.f32 %v3807_v22, %v3806_v20  ;;  %v3814_v26 = vadd.f32 %v3813_v23, %v3812_v21  ;;  %v3809_v27 = vpop.f32.mrb[2].mxu0  ;;  %v3815_v28 = vpop.f32.mrb[2].mxu1 }
 0x11d   : > { %v3810_v29 = vpop.f32.mrb[3].mxu0  ;;  %v3816_v30 = vpop.f32.mrb[3].mxu1 }
 0x11e   : > { %v3811_v32 = vadd.f32 %v3810_v29, %v3809_v27  ;;  %v3817_v33 = vadd.f32 %v3816_v30, %v3815_v28  ;;  %v966_v34 = vadd.f32 %v3814_v26, %v962_v24  ;;  %v964_v35 = vadd.f32 %v3808_v25, %v962_v24 }
 0x120   : > { %974 = vadd.xlane.f32.xlu1 %v966_v34  ;;  %970 = vadd.xlane.f32.xlu0 %v964_v35  ;;  %v967_v36 = vadd.f32 %v3817_v33, %v963_v31  ;;  %v965_v37 = vadd.f32 %v3811_v32, %v963_v31 }
 0x124   : > { %976 = vadd.xlane.f32.xlu1 %v967_v36  ;;  %972 = vadd.xlane.f32.xlu0 %v965_v37 }
 0x1ad   : > { %v975_v38 = vpop.xlane.xlu1 %974  ;;  %v971_v39 = vpop.xlane.xlu0 %970 }
 0x1ae   : > { %v981_v40 = vmul.f32 0.0078125, %v975_v38  ;;  %v979_v41 = vmul.f32 0.0078125, %v971_v39 }
 0x1b0   : > { %v983_v42 = vsub.f32 %v964_v35, %v979_v41  ;;  %v985_v45 = vsub.f32 %v966_v34, %v981_v40 }
 0x1b1   : > { %v977_v43 = vpop.xlane.xlu1 %976  ;;  %v973_v44 = vpop.xlane.xlu0 %972 }
 0x1b2   : > { %v982_v46 = vmul.f32 0.0078125, %v977_v43  ;;  %v980_v47 = vmul.f32 0.0078125, %v973_v44  ;;  %v987_v48 = vmul.f32 %v983_v42, %v983_v42  ;;  %v989_v51 = vmul.f32 %v985_v45, %v985_v45 }
 0x1b4   : > { %v984_v49 = vsub.f32 %v965_v37, %v980_v47  ;;  %991 = vadd.xlane.f32.xlu0 %v987_v48  ;;  %v986_v50 = vsub.f32 %v967_v36, %v982_v46 }
 0x1b6   : > { %v988_v52 = vmul.f32 %v984_v49, %v984_v49  ;;  %v990_v53 = vmul.f32 %v986_v50, %v986_v50 }
 0x1b8   : > { %995 = vadd.xlane.f32.xlu0 %v989_v51  ;;  %993 = vadd.xlane.f32.xlu1 %v988_v52 }
 0x1bc   : > { %997 = vadd.xlane.f32.xlu1 %v990_v53 }
 0x241   : > { %v992_v54 = vpop.xlane.xlu0 %991 }
 0x242   : > { %v999_v55 = vmul.f32 0.0078125, %v992_v54 }
 0x244   : > { %v1003_v56 = vadd.f32 1e-05, %v999_v55 }
 0x245   : > { %v994_v57 = vpop.xlane.xlu1 %993  ;;  %v996_v58 = vpop.xlane.xlu0 %995 }
 0x246   : > { %4141 = vrsqrt.f32 %v1003_v56  ;;  %v1000_v59 = vmul.f32 0.0078125, %v994_v57  ;;  %v1001_v60 = vmul.f32 0.0078125, %v996_v58 }
 0x248   : > { %v1004_v61 = vadd.f32 1e-05, %v1000_v59  ;;  %v1005_v62 = vadd.f32 1e-05, %v1001_v60 }
 0x249   : > { %v998_v63 = vpop.xlane.xlu1 %997 }
 0x24a   : > { %4143 = vrsqrt.f32 %v1004_v61  ;;  %v1002_v0 = vmul.f32 0.0078125, %v998_v63 }
 0x24b   : > { %4145 = vrsqrt.f32 %v1005_v62 }
 0x24c   : > { %v1006_v1 = vadd.f32 1e-05, %v1002_v0 }
 0x24e   : > { %4147 = vrsqrt.f32 %v1006_v1 }
 0x250   : > { %v4142_v2 = vpop.eup %4141 }
 0x251   : > { %v1011_v4 = vmul.f32 %v4142_v2, %v983_v42 }
 0x253   : > { %v1021_v6 = vmul.f32 %v3647_v3, %v1011_v4 }
 0x254   : > { %v4144_v7 = vpop.eup %4143 }
 0x255   : > { %v4146_v8 = vpop.eup %4145  ;;  %v1031_v9 = vadd.f32 %v3648_v5, %v1021_v6  ;;  %v1012_v10 = vmul.f32 %v4144_v7, %v984_v49 }
 0x256   : > { %v1013_v11 = vmul.f32 %v4146_v8, %v985_v45 }
 0x257   : > { %1035 = vst [vmem:[#allocation3] sm:$0xff] %v1031_v9  ;;  %v1022_v12 = vmul.f32 %v3647_v3, %v1012_v10 }
 0x258   : > { %v4148_v13 = vpop.eup %4147  ;;  %v1023_v14 = vmul.f32 %v3647_v3, %v1013_v11 }
 0x259   : > { %v1032_v15 = vadd.f32 %v3648_v5, %v1022_v12  ;;  %v1014_v16 = vmul.f32 %v4148_v13, %v986_v50 }
 0x25a   : > { %v1033_v17 = vadd.f32 %v3648_v5, %v1023_v14 }
 0x25b   : > { %1036 = vst [vmem:[#allocation3 + $0x8] sm:$0xff] %v1032_v15  ;;  %v1024_v18 = vmul.f32 %v3647_v3, %v1014_v16 }
 0x25c   : > { %1037 = vst [vmem:[#allocation3 + $0x10] sm:$0xff] %v1033_v17 }
 0x25d   : > { %v1034_v19 = vadd.f32 %v3648_v5, %v1024_v18 }
 0x25f   : > { %1038 = vst [vmem:[#allocation3 + $0x18] sm:$0xff] %v1034_v19 }
 0x260 PF: > { %v1039_v20 = vld [vmem:[#allocation3] sm:$0xff]  ;;  %v4151_v25 = vld [vmem:[%s4614_s17] ss:$12 sps:$4 sm:$0xff]   ;;  %v4152_v26 = vld [vmem:[%s4614_s17 + $0x1c] ss:$12 sps:$4 sm:$0xff]   ;;  %v4471_v59 = vmov 0   ;;  %s5365_s5 = scalar_lea.vmem %s5330_s10, %s4593_s29  ;;  %s5366_s26 = scalar_lea.vmem %s5331_s11, %s4593_s29 }
 0x261   : > { %1045 = vadd.xlane.f32.xlu0 %v1039_v20  ;;  %v4149_v24 = vld [vmem:[%s4614_s17 + $0x4] ss:$12 sps:$4 sm:$0xff]   ;;  %v4154_v27 = vld [vmem:[%s4614_s17 + $0x8] ss:$12 sps:$4 sm:$0xff]   ;;  %v4158_v46 = vld [vmem:[%s4614_s17 + $0x20] ss:$12 sps:$4 sm:$0xff]   ;;  %1321 = vmatprep.mubr.bf16.mxu0 %v4471_v59  ;;  %s5367_s19 = scalar_lea.vmem %s5332_s12, %s4593_s29 }
 0x262   : > { %v1040_v22 = vld [vmem:[#allocation3 + $0x8] sm:$0xff]  ;;  %1289 = vmatprep.subr.bf16.mxu0 %v4149_v24  ;;  %3926 = vmatprep.subr.bf16.mxu1 %v4154_v27  ;;  %v4156_v45 = vld [vmem:[%s4614_s17 + $0x34] ss:$12 sps:$4 sm:$0xff]   ;;  %v4164_v51 = vld [vmem:[%s4614_s17 + $0x64] ss:$12 sps:$4 sm:$0xff]   ;;  %s5361_s25 = sld [smem:[#allocation12_spill]] }
 0x263   : > { %v1041_v21 = vld [vmem:[#allocation3 + $0x10] sm:$0xff]  ;;  %1290 = vmatpush1.bf16.msra.mxu0 %v4151_v25  ;;  %3927 = vmatpush3.bf16.msra.mxu1 %v4154_v27  ;;  %v4159_v47 = vld [vmem:[%s4614_s17 + $0x30] ss:$12 sps:$4 sm:$0xff]   ;;  %v4160_v48 = vld [vmem:[%s4614_s17 + $0x4c] ss:$12 sps:$4 sm:$0xff]   ;;  %s5363_s1 = sld [smem:[#allocation13_spill]] }
 0x264   : > { %1049 = vadd.xlane.f32.xlu1 %v1041_v21  ;;  %1291 = vmatprep.subr.bf16.mxu0 %v4152_v26  ;;  %v4155_v44 = vld [vmem:[%s4614_s17 + $0x18] ss:$12 sps:$4 sm:$0xff]   ;;  %v4163_v50 = vld [vmem:[%s4614_s17 + $0x48] ss:$12 sps:$4 sm:$0xff]   ;;  %v4166_v52 = vld [vmem:[%s4614_s17 + $0x50] ss:$12 sps:$4 sm:$0xff]  }
 0x265   : > { %1047 = vadd.xlane.f32.xlu0 %v1040_v22  ;;  %3928 = vmatprep.subr.bf16.mxu1 %v4158_v46  ;;  %v4162_v49 = vld [vmem:[%s4614_s17 + $0x38] ss:$12 sps:$4 sm:$0xff]   ;;  %v4167_v53 = vld [vmem:[%s4614_s17 + $0x60] ss:$12 sps:$4 sm:$0xff]   ;;  %v4168_v54 = vld [vmem:[%s4614_s17 + $0x7c] ss:$12 sps:$4 sm:$0xff]  }
 0x266   : > { %v1042_v23 = vld [vmem:[#allocation3 + $0x18] sm:$0xff]  ;;  %v4171_v56 = vld [vmem:[%s4614_s17 + $0x78] ss:$12 sps:$4 sm:$0xff]   ;;  %v4172_v57 = vld [vmem:[%s4614_s17 + $0x94] ss:$12 sps:$4 sm:$0xff]   ;;  %vm4473_vm0 = vmmov 0  }
 0x267   : > { %1292 = vmatpush1.bf16.msra.mxu0 %v4155_v44  ;;  %3929 = vmatpush3.bf16.msra.mxu1 %v4158_v46  ;;  %v4170_v55 = vld [vmem:[%s4614_s17 + $0x68] ss:$12 sps:$4 sm:$0xff]   ;;  %v4174_v58 = vld [vmem:[%s4614_s17 + $0x80] ss:$12 sps:$4 sm:$0xff]   ;;  %v4175_v60 = vld [vmem:[%s4614_s17 + $0x90] ss:$12 sps:$4 sm:$0xff]  }
 0x268   : > { %1051 = vadd.xlane.f32.xlu1 %v1042_v23  ;;  %1293 = vmatprep.subr.bf16.mxu0 %v4156_v45  ;;  %v4176_v61 = vld [vmem:[%s4614_s17 + $0xac] ss:$12 sps:$4 sm:$0xff]   ;;  %v4179_v63 = vld [vmem:[%s4614_s17 + $0xa8] ss:$12 sps:$4 sm:$0xff]   ;;  %v4180_v0 = vld [vmem:[%s4614_s17 + $0xb0] ss:$12 sps:$4 sm:$0xff]   ;;  %s5362_s18 = scalar_lea.vmem %s5361_s25, %s4593_s29 }
 0x269   : > { %3930 = vmatprep.subr.bf16.mxu1 %v4162_v49  ;;  %v4178_v62 = vld [vmem:[%s4614_s17 + $0x98] ss:$12 sps:$4 sm:$0xff]   ;;  %v3649_v15 = vld [vmem:[%s5362_s18] ss:$0 sm:$0xff]  ;;  %s5364_s27 = scalar_lea.vmem %s5363_s1, %s4593_s29  ;;  %vm1394_vm1 = vcmask 261120   ;;  %s4475_s6 = smov 64  }
 0x26a   : > { %s4476_s28 = smov 32   ;;  %vm1442_vm2 = vcmask 130048   ;;  %vm1641_vm3 = vcmask 523520   ;;  %vm1769_vm4 = vcmask 785920   ;;  %vm1897_vm5 = vcmask 1048320   ;;  %s5368_s29 = sld [smem:[#allocation7_spill]] }
 0x26b   : > { %1294 = vmatpush1.bf16.msra.mxu0 %v4159_v47  ;;  %3931 = vmatpush3.bf16.msra.mxu1 %v4162_v49 }
 0x26c   : > { %1295 = vmatprep.subr.bf16.mxu0 %v4160_v48  ;;  %3932 = vmatprep.subr.bf16.mxu1 %v4166_v52 }
 0x26f   : > { %1296 = vmatpush1.bf16.msra.mxu0 %v4163_v50  ;;  %3933 = vmatpush3.bf16.msra.mxu1 %v4166_v52 }
 0x270   : > { %1297 = vmatprep.subr.bf16.mxu0 %v4164_v51  ;;  %3934 = vmatprep.subr.bf16.mxu1 %v4170_v55  ;;  %s5369_s1 = sadd.s32 4294967295, %s5368_s29  }
 0x271   : > { %p5284_p6 = scmp.eq.s32.totalorder %s5369_s1, 1 }
 0x273   : > { %1298 = vmatpush1.bf16.msra.mxu0 %v4167_v53  ;;  %3935 = vmatpush3.bf16.msra.mxu1 %v4170_v55 }
 0x274   : > { %1299 = vmatprep.subr.bf16.mxu0 %v4168_v54  ;;  %3936 = vmatprep.subr.bf16.mxu1 %v4174_v58 }
 0x277   : > { %1300 = vmatpush1.bf16.msra.mxu0 %v4171_v56  ;;  %3937 = vmatpush3.bf16.msra.mxu1 %v4174_v58 }
 0x278   : > { %1301 = vmatprep.subr.bf16.mxu0 %v4172_v57  ;;  %3938 = vmatprep.subr.bf16.mxu1 %v4178_v62 }
 0x27b   : > { %1302 = vmatpush1.bf16.msra.mxu0 %v4175_v60  ;;  %3939 = vmatpush3.bf16.msra.mxu1 %v4178_v62 }
 0x27c   : > { %1303 = vmatprep.subr.bf16.mxu0 %v4176_v61  ;;  %3940 = vmatprep.subr.bf16.mxu1 %v4180_v0 }
 0x27f   : > { %1304 = vmatpush1.bf16.msra.mxu0 %v4179_v63  ;;  %3941 = vmatpush3.bf16.msra.mxu1 %v4180_v0 }
 0x2ee   : > { %v1046_v28 = vpop.xlane.xlu0 %1045 }
 0x2ef   : > { %v1054_v30 = vmul.f32 0.0078125, %v1046_v28 }
 0x2f1   : > { %v1050_v29 = vpop.xlane.xlu1 %1049  ;;  %v4731_v32 = vsub.f32 %v1039_v20, %v1054_v30  ;;  %v3650_v20 = vld [vmem:[%s5364_s27] ss:$0 sm:$0xff] }
 0x2f2   : > { %v1056_v31 = vmul.f32 0.0078125, %v1050_v29  ;;  %v1048_v34 = vpop.xlane.xlu0 %1047 }
 0x2f3   : > { %v1055_v36 = vmul.f32 0.0078125, %v1048_v34  ;;  %v1062_v37 = vmul.f32 %v4731_v32, %v4731_v32  ;;  %v1146_v34 = vlaneseq }
 0x2f4   : > { %v4733_v33 = vsub.f32 %v1041_v21, %v1056_v31 }
 0x2f5   : > { %v1052_v35 = vpop.xlane.xlu1 %1051  ;;  %v4737_v39 = vsub.f32 %v1040_v22, %v1055_v36  ;;  %1066 = vadd.xlane.f32.xlu0 %v1062_v37  ;;  %v1144_v37 = vld [vmem:[%s4623_s20] sm:$0x7]  ;;  %s4474_s20 = smov 96  }
 0x2f6   : > { %v1057_v38 = vmul.f32 0.0078125, %v1052_v35  ;;  %v1064_v41 = vmul.f32 %v4733_v33, %v4733_v33  ;;  %v4789_v35 = vshrl.u32 %v1146_v34, 7 }
 0x2f7   : > { %v1063_v42 = vmul.f32 %v4737_v39, %v4737_v39 }
 0x2f8   : > { %v4739_v40 = vsub.f32 %v1042_v23, %v1057_v38  ;;  %v1148_v36 = vsub.s32 0, %v4789_v35  ;;  %v1152_v38 = vsub.s32 1, %v4789_v35 }
 0x2f9   : > { %1070 = vadd.xlane.f32.xlu0 %v1064_v41  ;;  %1068 = vadd.xlane.f32.xlu1 %v1063_v42 }
 0x2fa   : > { %v1065_v43 = vmul.f32 %v4739_v40, %v4739_v40  ;;  %v1153_v42 = vrot.slane %v1144_v37, %v1152_v38 }
 0x2fd   : > { %1072 = vadd.xlane.f32.xlu1 %v1065_v43 }
 0x382   : > { %v1067_v1 = vpop.xlane.xlu0 %1066 }
 0x383   : > { %v1074_v2 = vmul.f32 0.0078125, %v1067_v1 }
 0x385   : > { %v1078_v3 = vadd.f32 1e-05, %v1074_v2 }
 0x386   : > { %v1069_v4 = vpop.xlane.xlu1 %1068  ;;  %v1071_v5 = vpop.xlane.xlu0 %1070 }
 0x387   : > { %4269 = vrsqrt.f32 %v1078_v3  ;;  %v1075_v6 = vmul.f32 0.0078125, %v1069_v4  ;;  %v1076_v7 = vmul.f32 0.0078125, %v1071_v5 }
 0x389   : > { %v1079_v8 = vadd.f32 1e-05, %v1075_v6  ;;  %v1080_v9 = vadd.f32 1e-05, %v1076_v7 }
 0x38a   : > { %v1073_v10 = vpop.xlane.xlu1 %1072 }
 0x38b   : > { %4271 = vrsqrt.f32 %v1079_v8  ;;  %v1077_v11 = vmul.f32 0.0078125, %v1073_v10 }
 0x38c   : > { %4273 = vrsqrt.f32 %v1080_v9 }
 0x38d   : > { %v1081_v12 = vadd.f32 1e-05, %v1077_v11 }
 0x38f   : > { %4275 = vrsqrt.f32 %v1081_v12 }
 0x391   : > { %v4270_v13 = vpop.eup %4269 }
 0x392   : > { %v1086_v14 = vmul.f32 %v4270_v13, %v4731_v32 }
 0x394   : > { %v1096_v19 = vmul.f32 %v3649_v15, %v1086_v14 }
 0x395   : > { %v4272_v16 = vpop.eup %4271 }
 0x396   : > { %v4274_v17 = vpop.eup %4273  ;;  %v1087_v18 = vmul.f32 %v4272_v16, %v4737_v39  ;;  %v1106_v24 = vadd.f32 %v3650_v20, %v1096_v19  ;;  %v1156_v39 = vsub.s32 2, %v4789_v35 }
 0x397   : > { %v1088_v21 = vmul.f32 %v4274_v17, %v4733_v33  ;;  %v4472_v33 = vmov 0.0  }
 0x398   : > { %v1097_v22 = vmul.f32 %v3649_v15, %v1087_v18  ;;  %3946 = vmatprep.subr.bf16.mxu0 %v4472_v33  ;;  %3958 = vmatprep.subr.bf16.mxu1 %v4472_v33  ;;  %v1157_v44 = vrot.slane %v1144_v37, %v1156_v39 }
 0x399   : > { %v4276_v23 = vpop.eup %4275  ;;  %v1098_v27 = vmul.f32 %v3649_v15, %v1088_v21 }
 0x39a   : > { %v1107_v25 = vadd.f32 %v3650_v20, %v1097_v22  ;;  %v1089_v26 = vmul.f32 %v4276_v23, %v4739_v40  ;;  %v1149_v40 = vrot.slane %v1144_v37, %v1148_v36 }
 0x39b   : > { %v1108_v30 = vadd.f32 %v3650_v20, %v1098_v27 }
 0x39c   : > { %v1110_v28 = vpack.c.bf16 %v1107_v25, %v1106_v24  ;;  %v1099_v29 = vmul.f32 %v3649_v15, %v1089_v26 }
 0x39e   : > { %1322 = vmatmul.mubr.bf16.vlgmr.msra.gmra.mrb[0].mxu0 %v1110_v28  ;;  %3942 = vmatprep.mubr.bf16.mxu1 %v1110_v28  ;;  %v1109_v31 = vadd.f32 %v3650_v20, %v1099_v29 }
 0x39f   : > { %1331 = vmatprep.mubr.bf16.mxu0 %v4471_v59 }
 0x3a0   : > { %v1111_v32 = vpack.c.bf16 %v1109_v31, %v1108_v30 }
 0x3a2   : > { %3943 = vmatmul.mubr.bf16.vlgmr.msra.gmra.mrb[0].mxu1 %v1111_v32 }
 0x3a3   : > { %3960 = vmatprep.mubr.msk.bf16.mxu1 %vm4473_vm0, %v4472_v33 }
 0x3a6   : > { %1332 = vmatmul.mubr.bf16.gmra.mrb[4].mxu0 %v1111_v32 }
 0x3a7   : > { %3948 = vmatprep.mubr.msk.bf16.mxu0 %vm4473_vm0, %v4472_v33 }
 0x471   : > { %v1323_v41 = vpop.f32.mrb[0].mxu0 }
 0x472   : > { %v1325_v43 = vpop.f32.mrb[1].mxu0  ;;  %v1324_v46 = vadd.f32 %v1323_v41, %v1149_v40 }
 0x473   : > { %v1327_v45 = vpop.f32.mrb[2].mxu0  ;;  %v1326_v49 = vadd.f32 %v1325_v43, %v1153_v42 }
 0x474   : > { %v1328_v47 = vadd.f32 %v1327_v45, %v1149_v40  ;;  %v1329_v48 = vpop.f32.mrb[3].mxu0 }
 0x475   : > { %v1330_v50 = vadd.f32 %v1329_v48, %v1153_v42  ;;  %v3944_v51 = vpop.f32.mrb[0].mxu1 }
 0x476   : > { %v1391_v52 = vpack.c.bf16 %v1328_v47, %v1324_v46  ;;  %v1385_v53 = vadd.f32 %v3944_v51, %v1157_v44  ;;  %v1376_v54 = vpop.f32.mrb[1].mxu1 }
 0x477   : > { %v1392_v55 = vpack.c.bf16 %v1330_v50, %v1326_v49  ;;  %v3945_v56 = vpop.f32.mrb[2].mxu1  ;;  %v1377_v60 = vadd.f32 %v1376_v54, %v1157_v44 }
 0x478   : > { %v1388_v57 = vadd.f32 %v3945_v56, %v1157_v44  ;;  %1513 = vrot.lane.b32.xlu1 %v1391_v52, %s4474_s20  ;;  %v1379_v58 = vpop.f32.mrb[3].mxu1 }
 0x479   : > { %v1380_v61 = vadd.f32 %v1379_v58, %v1157_v44  ;;  %1516 = vrot.lane.b32.xlu0 %v1392_v55, %s4474_s20  ;;  %v1333_v62 = vpop.f32.mrb[4].mxu0  ;;  %v1399_v63 = vsel %vm1394_vm1, %v1392_v55, 0 }
 0x47a   : > { %v4804_v0 = vpack.c.bf16 %v1388_v57, %v1385_v53  ;;  %v1335_v1 = vpop.f32.mrb[5].mxu0  ;;  %3947 = vmatpush3.bf16.xpose.msra.mxu0 %v1399_v63  ;;  %v1334_v4 = vadd.f32 %v1333_v62, %v1149_v40 }
 0x47b   : > { %v4806_v2 = vpack.c.bf16 %v1380_v61, %v1377_v60  ;;  %v1337_v3 = vpop.f32.mrb[6].mxu0  ;;  %3952 = vmatprep.subr.bf16.mxu0 %v4472_v33  ;;  %v1336_v7 = vadd.f32 %v1335_v1, %v1153_v42 }
 0x47c   : > { %v1338_v5 = vadd.f32 %v1337_v3, %v1149_v40  ;;  %1645 = vrot.lane.b32.xlu1 %v1392_v55, %s4475_s6  ;;  %v1339_v6 = vpop.f32.mrb[7].mxu0 }
 0x47d   : > { %v1340_v8 = vadd.f32 %v1339_v6, %v1153_v42  ;;  %1773 = vrot.lane.b32.xlu0 %v1392_v55, %s4476_s28 }
 0x47e   : > { %v1899_v9 = vpack.c.bf16 %v1338_v5, %v1334_v4 }
 0x47f   : > { %v1900_v10 = vpack.c.bf16 %v1340_v8, %v1336_v7 }
 0x480   : > { %1643 = vrot.lane.b32.xlu1 %v1391_v52, %s4475_s6 }
 0x481   : > { %3949 = vmatmul.mubr.msk.bf16.vlgmr.msra.gmra.mrb[8].mxu0 %vm1394_vm1, %v1391_v52  ;;  %2022 = vrot.lane.b32.xlu0 %v1900_v10, %s4474_s20  ;;  %v1906_v20 = vsel %vm1394_vm1, %v1900_v10, 0 }
 0x482   : > { %3953 = vmatpush3.bf16.msra.mxu0 %v4806_v2  ;;  %3954 = vmatprep.mubr.msk.bf16.mxu0 %vm4473_vm0, %v4472_v33 }
 0x483   : > { %3964 = vmatprep.subr.bf16.mxu0 %v4472_v33 }
 0x484   : > { %1771 = vrot.lane.b32.xlu1 %v1391_v52, %s4476_s28 }
 0x485   : > { %2150 = vrot.lane.b32.xlu0 %v1900_v10, %s4475_s6 }
 0x488   : > { %2019 = vrot.lane.b32.xlu1 %v1899_v9, %s4474_s20 }
 0x489   : > { %2277 = vrot.lane.b32.xlu0 %v1900_v10, %s4476_s28 }
 0x48c   : > { %2148 = vrot.lane.b32.xlu1 %v1899_v9, %s4475_s6 }
 0x490   : > { %2275 = vrot.lane.b32.xlu1 %v1899_v9, %s4476_s28 }
 0x4ea   : > { %v1514_v11 = vpop.permute.xlu1 %1513 }
 0x4eb   : > { %v1517_v12 = vpop.permute.xlu0 %1516 }
 0x4ec   : > { %v1522_v13 = vsel %vm1394_vm1, %v1517_v12, 0 }
 0x4ed   : > { %3959 = vmatpush3.bf16.xpose.msra.mxu1 %v1522_v13 }
 0x4ee   : > { %3970 = vmatprep.subr.bf16.mxu1 %v4472_v33  ;;  %v1646_v14 = vpop.permute.xlu1 %1645 }
 0x4ef   : > { %v1651_v15 = vsel %vm1394_vm1, %v1646_v14, 0  ;;  %v1774_v16 = vpop.permute.xlu0 %1773 }
 0x4f0   : > { %v1779_v18 = vsel %vm1394_vm1, %v1774_v16, 0 }
 0x4f2   : > { %v1644_v17 = vpop.permute.xlu1 %1643 }
 0x4f3   : > { %v2023_v21 = vpop.permute.xlu0 %2022 }
 0x4f4   : > { %3961 = vmatmul.mubr.msk.bf16.vlgmr.msra.gmra.mrb[4].mxu1 %vm1394_vm1, %v1514_v11  ;;  %v2028_v22 = vsel %vm1394_vm1, %v2023_v21, 0 }
 0x4f5   : > { %3971 = vmatpush3.bf16.xpose.msra.mxu1 %v1651_v15  ;;  %3972 = vmatprep.mubr.msk.bf16.mxu1 %vm4473_vm0, %v4472_v33 }
 0x4f6   : > { %3982 = vmatprep.subr.bf16.mxu1 %v4472_v33  ;;  %v1772_v19 = vpop.permute.xlu1 %1771 }
 0x4f7   : > { %v2151_v23 = vpop.permute.xlu0 %2150 }
 0x4f8   : > { %v2156_v25 = vsel %vm1394_vm1, %v2151_v23, 0 }
 0x4fa   : > { %v2020_v24 = vpop.permute.xlu1 %2019 }
 0x4fb   : > { %v2278_v26 = vpop.permute.xlu0 %2277 }
 0x4fc   : > { %3973 = vmatmul.mubr.msk.bf16.vlgmr.msra.gmra.mrb[8].mxu1 %vm1394_vm1, %v1644_v17  ;;  %v2283_v28 = vsel %vm1394_vm1, %v2278_v26, 0 }
 0x4fd   : > { %3983 = vmatpush3.bf16.xpose.msra.mxu1 %v1779_v18  ;;  %3984 = vmatprep.mubr.msk.bf16.mxu1 %vm4473_vm0, %v4472_v33 }
 0x4fe   : > { %3994 = vmatprep.subr.bf16.mxu1 %v4472_v33  ;;  %v2149_v27 = vpop.permute.xlu1 %2148 }
 0x502   : > { %v2276_v29 = vpop.permute.xlu1 %2275 }
 0x504   : > { %3985 = vmatmul.mubr.msk.bf16.vlgmr.msra.gmra.mrb[12].mxu1 %vm1394_vm1, %v1772_v19 }
 0x505   : > { %3995 = vmatpush3.bf16.xpose.msra.mxu1 %v1906_v20  ;;  %3996 = vmatprep.mubr.msk.bf16.mxu1 %vm4473_vm0, %v4472_v33 }
 0x506   : > { %4006 = vmatprep.subr.bf16.mxu1 %v4472_v33 }
 0x50c   : > { %3997 = vmatmul.mubr.msk.bf16.vlgmr.msra.gmra.mrb[16].mxu1 %vm1394_vm1, %v1899_v9 }
 0x50d   : > { %4007 = vmatpush3.bf16.xpose.msra.mxu1 %v2028_v22  ;;  %4008 = vmatprep.mubr.msk.bf16.mxu1 %vm4473_vm0, %v4472_v33 }
 0x50e   : > { %4018 = vmatprep.subr.bf16.mxu1 %v4472_v33 }
 0x514   : > { %4009 = vmatmul.mubr.msk.bf16.vlgmr.msra.gmra.mrb[20].mxu1 %vm1394_vm1, %v2020_v24 }
 0x515   : > { %4019 = vmatpush3.bf16.xpose.msra.mxu1 %v2156_v25  ;;  %4020 = vmatprep.mubr.msk.bf16.mxu1 %vm4473_vm0, %v4472_v33 }
 0x516   : > { %4030 = vmatprep.subr.bf16.mxu1 %v4472_v33 }
 0x51c   : > { %4021 = vmatmul.mubr.msk.bf16.vlgmr.msra.gmra.mrb[24].mxu1 %vm1394_vm1, %v2149_v27 }
 0x51d   : > { %4031 = vmatpush3.bf16.xpose.msra.mxu1 %v2283_v28  ;;  %4032 = vmatprep.mubr.msk.bf16.mxu1 %vm4473_vm0, %v4472_v33 }
 0x524   : > { %4033 = vmatmul.mubr.msk.bf16.vlgmr.msra.gmra.mrb[28].mxu1 %vm1394_vm1, %v2276_v29 }
 0x554   : > { %v1435_v30 = vpop.f32.mrb[8].mxu0 }
 0x555   : > { %v3950_v31 = vpop.f32.mrb[9].mxu0  ;;  %v1443_v32 = vsel %vm1442_vm2, %v1435_v30, -inf }
 0x556   : > { %v1438_v34 = vpop.f32.mrb[10].mxu0  ;;  %1444 = vmax.xlane.f32.xlu0 %v1443_v32 }
 0x557   : > { %v3951_v37 = vpop.f32.mrb[11].mxu0  ;;  %v1446_v40 = vsel %vm1442_vm2, %v1438_v34, -inf }
 0x558   : > { %1447 = vmax.xlane.f32.xlu1 %v1446_v40 }
 0x5c7   : > { %v4858_v41 = vpop.f32.mrb[4].mxu1 }
 0x5c8   : > { %v3962_v42 = vpop.f32.mrb[5].mxu1  ;;  %v1565_v43 = vsel %vm1442_vm2, %v4858_v41, -inf }
 0x5c9   : > { %1566 = vmax.xlane.f32.xlu0 %v1565_v43  ;;  %v4862_v44 = vpop.f32.mrb[6].mxu1 }
 0x5ca   : > { %v3963_v45 = vpop.f32.mrb[7].mxu1  ;;  %v1568_v46 = vsel %vm1442_vm2, %v4862_v44, -inf }
 0x5cd   : > { %1569 = vmax.xlane.f32.xlu0 %v1568_v46 }
 0x5cf   : > { %v4866_v47 = vpop.f32.mrb[8].mxu1 }
 0x5d0   : > { %v3974_v48 = vpop.f32.mrb[9].mxu1  ;;  %v1694_v49 = vsel %vm1442_vm2, %v4866_v47, -inf }
 0x5d1   : > { %1695 = vmax.xlane.f32.xlu0 %v1694_v49  ;;  %v4870_v50 = vpop.f32.mrb[10].mxu1 }
 0x5d2   : > { %v3975_v51 = vpop.f32.mrb[11].mxu1  ;;  %v1697_v52 = vsel %vm1442_vm2, %v4870_v50, -inf }
 0x5d3   : > { %1698 = vmax.xlane.f32.xlu1 %v1697_v52 }
 0x5d7   : > { %v4874_v53 = vpop.f32.mrb[12].mxu1 }
 0x5d8   : > { %v3986_v54 = vpop.f32.mrb[13].mxu1  ;;  %v1822_v55 = vsel %vm1442_vm2, %v4874_v53, -inf }
 0x5d9   : > { %1823 = vmax.xlane.f32.xlu0 %v1822_v55  ;;  %v4878_v56 = vpop.f32.mrb[14].mxu1 }
 0x5da   : > { %v3987_v57 = vpop.f32.mrb[15].mxu1  ;;  %v1825_v58 = vsel %vm1442_vm2, %v4878_v56, -inf }
 0x5db   : > { %1826 = vmax.xlane.f32.xlu1 %v1825_v58 }
 0x5df   : > { %v4882_v60 = vpop.f32.mrb[16].mxu1 }
 0x5e0   : > { %v3998_v61 = vpop.f32.mrb[17].mxu1  ;;  %v1949_v62 = vsel %vm1442_vm2, %v4882_v60, -inf }
 0x5e1   : > { %1950 = vmax.xlane.f32.xlu0 %v1949_v62  ;;  %v4886_v63 = vpop.f32.mrb[18].mxu1 }
 0x5e2   : > { %v3999_v1 = vpop.f32.mrb[19].mxu1  ;;  %v1952_v3 = vsel %vm1442_vm2, %v4886_v63, -inf }
 0x5e3   : > { %1953 = vmax.xlane.f32.xlu1 %v1952_v3  ;;  %v1445_v4 = vpop.xlane.xlu0 %1444 }
 0x5e4   : > { %v1449_v5 = vsub.f32 %v1435_v30, %v1445_v4 }
 0x5e5   : > { %v1448_v6 = vpop.xlane.xlu1 %1447 }
 0x5e6   : > { %v1451_v7 = vmul.f32 1.442695, %v1449_v5  ;;  %v1450_v8 = vsub.f32 %v1438_v34, %v1448_v6 }
 0x5e7   : > { %v4890_v9 = vpop.f32.mrb[20].mxu1 }
 0x5e8   : > { %4277 = vpow2.f32 %v1451_v7  ;;  %v1453_v10 = vmul.f32 1.442695, %v1450_v8  ;;  %v4010_v11 = vpop.f32.mrb[21].mxu1  ;;  %v2071_v12 = vsel %vm1442_vm2, %v4890_v9, -inf }
 0x5e9   : > { %2072 = vmax.xlane.f32.xlu0 %v2071_v12  ;;  %v4894_v13 = vpop.f32.mrb[22].mxu1 }
 0x5ea   : > { %4279 = vpow2.f32 %v1453_v10  ;;  %v4011_v14 = vpop.f32.mrb[23].mxu1  ;;  %v2074_v15 = vsel %vm1442_vm2, %v4894_v13, -inf }
 0x5eb   : > { %2075 = vmax.xlane.f32.xlu1 %v2074_v15 }
 0x5ef   : > { %v4898_v16 = vpop.f32.mrb[24].mxu1 }
 0x5f0   : > { %v4022_v17 = vpop.f32.mrb[25].mxu1  ;;  %v2199_v18 = vsel %vm1442_vm2, %v4898_v16, -inf }
 0x5f1   : > { %2200 = vmax.xlane.f32.xlu0 %v2199_v18  ;;  %v4902_v19 = vpop.f32.mrb[26].mxu1 }
 0x5f2   : > { %v4904_v20 = vpop.eup %4277  ;;  %v4023_v21 = vpop.f32.mrb[27].mxu1  ;;  %v2202_v22 = vsel %vm1442_vm2, %v4902_v19, -inf }
 0x5f3   : > { %2203 = vmax.xlane.f32.xlu1 %v2202_v22  ;;  %v1455_v23 = vsel %vm1442_vm2, %v4904_v20, 0.0 }
 0x5f4   : > { %v4910_v24 = vpop.eup %4279 }
 0x5f5   : > { %1456 = vadd.xlane.f32.xlu0 %v1455_v23  ;;  %v1458_v25 = vsel %vm1442_vm2, %v4910_v24, 0.0 }
 0x5f7   : > { %1459 = vadd.xlane.f32.xlu1 %v1458_v25  ;;  %v4914_v26 = vpop.f32.mrb[28].mxu1 }
 0x5f8   : > { %v4034_v27 = vpop.f32.mrb[29].mxu1  ;;  %v2326_v28 = vsel %vm1442_vm2, %v4914_v26, -inf }
 0x5f9   : > { %v4918_v29 = vpop.f32.mrb[30].mxu1  ;;  %2327 = vmax.xlane.f32.xlu0 %v2326_v28 }
 0x5fa   : > { %v4035_v30 = vpop.f32.mrb[31].mxu1  ;;  %v2329_v31 = vsel %vm1442_vm2, %v4918_v29, -inf }
 0x5fb   : > { %2330 = vmax.xlane.f32.xlu1 %v2329_v31 }
 0x60c   : > { %1717 = vrot.lane.b32.xlu1 %v4806_v2, %s4475_s6 }
 0x60f   : > { %1589 = vrot.lane.b32.xlu0 %v4806_v2, %s4474_s20 }
 0x656   : > { %v1567_v32 = vpop.xlane.xlu0 %1566 }
 0x657   : > { %v1571_v34 = vsub.f32 %v4858_v41, %v1567_v32 }
 0x659   : > { %v1573_v37 = vmul.f32 1.442695, %v1571_v34 }
 0x65a   : > { %v1570_v40 = vpop.xlane.xlu0 %1569 }
 0x65b   : > { %4281 = vpow2.f32 %v1573_v37  ;;  %v1572_v42 = vsub.f32 %v4862_v44, %v1570_v40 }
 0x65d   : > { %v1575_v43 = vmul.f32 1.442695, %v1572_v42 }
 0x65e   : > { %v1696_v45 = vpop.xlane.xlu0 %1695 }
 0x65f   : > { %4283 = vpow2.f32 %v1575_v43  ;;  %v1700_v46 = vsub.f32 %v4866_v47, %v1696_v45 }
 0x660   : > { %v1699_v48 = vpop.xlane.xlu1 %1698 }
 0x661   : > { %v1702_v49 = vmul.f32 1.442695, %v1700_v46  ;;  %v1701_v51 = vsub.f32 %v4870_v50, %v1699_v48 }
 0x663   : > { %4285 = vpow2.f32 %v1702_v49  ;;  %v1704_v52 = vmul.f32 1.442695, %v1701_v51 }
 0x665   : > { %v4930_v54 = vpop.eup %4281  ;;  %4287 = vpow2.f32 %v1704_v52 }
 0x666   : > { %v1824_v41 = vpop.xlane.xlu0 %1823  ;;  %v1577_v55 = vsel %vm1442_vm2, %v4930_v54, 0.0 }
 0x667   : > { %v1828_v44 = vsub.f32 %v4874_v53, %v1824_v41  ;;  %1578 = vadd.xlane.f32.xlu0 %v1577_v55 }
 0x668   : > { %v1827_v57 = vpop.xlane.xlu1 %1826 }
 0x669   : > { %v4935_v58 = vpop.eup %4283  ;;  %v1830_v47 = vmul.f32 1.442695, %v1828_v44  ;;  %v1829_v61 = vsub.f32 %v4878_v56, %v1827_v57 }
 0x66a   : > { %v1580_v50 = vsel %vm1442_vm2, %v4935_v58, 0.0 }
 0x66b   : > { %4289 = vpow2.f32 %v1830_v47  ;;  %v1832_v62 = vmul.f32 1.442695, %v1829_v61  ;;  %1581 = vadd.xlane.f32.xlu1 %v1580_v50 }
 0x66d   : > { %v4940_v1 = vpop.eup %4285  ;;  %4291 = vpow2.f32 %v1832_v62 }
 0x66e   : > { %v1951_v3 = vpop.xlane.xlu0 %1950  ;;  %v1706_v53 = vsel %vm1442_vm2, %v4940_v1, 0.0 }
 0x66f   : > { %v4944_v4 = vpop.eup %4287  ;;  %v1955_v5 = vsub.f32 %v4882_v60, %v1951_v3  ;;  %1707 = vadd.xlane.f32.xlu0 %v1706_v53 }
 0x670   : > { %v1954_v6 = vpop.xlane.xlu1 %1953  ;;  %v1709_v56 = vsel %vm1442_vm2, %v4944_v4, 0.0 }
 0x671   : > { %v1957_v7 = vmul.f32 1.442695, %v1955_v5  ;;  %v1956_v8 = vsub.f32 %v4886_v63, %v1954_v6  ;;  %1710 = vadd.xlane.f32.xlu1 %v1709_v56 }
 0x673   : > { %4293 = vpow2.f32 %v1957_v7  ;;  %v1959_v10 = vmul.f32 1.442695, %v1956_v8 }
 0x675   : > { %v4950_v11 = vpop.eup %4289  ;;  %4295 = vpow2.f32 %v1959_v10 }
 0x676   : > { %v2073_v12 = vpop.xlane.xlu0 %2072  ;;  %v1834_v14 = vsel %vm1442_vm2, %v4950_v11, 0.0 }
 0x677   : > { %v4954_v15 = vpop.eup %4291  ;;  %v2077_v60 = vsub.f32 %v4890_v9, %v2073_v12  ;;  %1835 = vadd.xlane.f32.xlu0 %v1834_v14 }
 0x678   : > { %v2076_v17 = vpop.xlane.xlu1 %2075  ;;  %v1837_v18 = vsel %vm1442_vm2, %v4954_v15, 0.0 }
 0x679   : > { %v2079_v63 = vmul.f32 1.442695, %v2077_v60  ;;  %v2078_v21 = vsub.f32 %v4894_v13, %v2076_v17  ;;  %1838 = vadd.xlane.f32.xlu1 %v1837_v18 }
 0x67b   : > { %4297 = vpow2.f32 %v2079_v63  ;;  %v2081_v22 = vmul.f32 1.442695, %v2078_v21 }
 0x67d   : > { %v4960_v23 = vpop.eup %4293  ;;  %4299 = vpow2.f32 %v2081_v22 }
 0x67e   : > { %v2201_v25 = vpop.xlane.xlu0 %2200  ;;  %v1961_v27 = vsel %vm1442_vm2, %v4960_v23, 0.0 }
 0x67f   : > { %v4964_v28 = vpop.eup %4295  ;;  %1962 = vadd.xlane.f32.xlu0 %v1961_v27  ;;  %v2205_v62 = vsub.f32 %v4898_v16, %v2201_v25 }
 0x680   : > { %v2204_v9 = vpop.xlane.xlu1 %2203  ;;  %v1964_v30 = vsel %vm1442_vm2, %v4964_v28, 0.0 }
 0x681   : > { %v2206_v31 = vsub.f32 %v4902_v19, %v2204_v9  ;;  %1965 = vadd.xlane.f32.xlu1 %v1964_v30  ;;  %v2207_v3 = vmul.f32 1.442695, %v2205_v62 }
 0x682   : > { %v1457_v13 = vpop.xlane.xlu0 %1456 }
 0x683   : > { %v2209_v32 = vmul.f32 1.442695, %v2206_v31  ;;  %4301 = vrcp.f32 %v1457_v13 }
 0x684   : > { %v1460_v34 = vpop.xlane.xlu1 %1459 }
 0x685   : > { %v4969_v37 = vpop.eup %4297  ;;  %4303 = vpow2.f32 %v2209_v32 }
 0x686   : > { %4305 = vrcp.f32 %v1460_v34  ;;  %v2328_v40 = vpop.xlane.xlu0 %2327  ;;  %v2083_v42 = vsel %vm1442_vm2, %v4969_v37, 0.0 }
 0x687   : > { %v4973_v43 = vpop.eup %4299  ;;  %v2332_v45 = vsub.f32 %v4914_v26, %v2328_v40  ;;  %2084 = vadd.xlane.f32.xlu1 %v2083_v42 }
 0x688   : > { %v2331_v46 = vpop.xlane.xlu1 %2330  ;;  %v2086_v49 = vsel %vm1442_vm2, %v4973_v43, 0.0 }
 0x689   : > { %v2334_v19 = vmul.f32 1.442695, %v2332_v45  ;;  %v2333_v48 = vsub.f32 %v4918_v29, %v2331_v46 }
 0x68a   : > { %v1590_v61 = vpop.permute.xlu0 %1589 }
 0x68b   : > { %4307 = vpow2.f32 %v2334_v19  ;;  %v2336_v51 = vmul.f32 1.442695, %v2333_v48  ;;  %2087 = vadd.xlane.f32.xlu1 %v2086_v49 }
 0x68c   : > { %v1718_v5 = vpop.permute.xlu1 %1717 }
 0x68d   : > { %4309 = vpow2.f32 %v2336_v51  ;;  %v4302_v52 = vpop.eup %4301 }
 0x68e   : > { %v1463_v26 = vmul.f32 %v4302_v52, %v4904_v20  ;;  %4311 = vpow2.f32 %v2207_v3 }
 0x68f   : > { %v4979_v41 = vpop.eup %4303 }
 0x690   : > { %v4306_v55 = vpop.eup %4305  ;;  %v2214_v44 = vsel %vm1442_vm2, %v4979_v41, 0.0 }
 0x691   : > { %v1464_v57 = vmul.f32 %v4306_v55, %v4910_v24  ;;  %2215 = vadd.xlane.f32.xlu1 %v2214_v44 }
 0x693   : > { %v1465_v29 = vpack.c.bf16 %v1464_v57, %v1463_v26 }
 0x695   : > { %v4985_v47 = vpop.eup %4307  ;;  %3955 = vmatmul.mubr.msk.bf16.vlgmr.msra.gmra.mrb[12].mxu0 %vm1442_vm2, %v1465_v29  ;;  %1845 = vrot.lane.b32.xlu0 %v4806_v2, %s4476_s28 }
 0x696   : > { %3965 = vmatpush3.bf16.msra.mxu0 %v1590_v61  ;;  %v2338_v50 = vsel %vm1442_vm2, %v4985_v47, 0.0  ;;  %3966 = vmatprep.mubr.msk.bf16.mxu0 %vm4473_vm0, %v4472_v33 }
 0x697   : > { %v4994_v20 = vpop.eup %4309  ;;  %2339 = vadd.xlane.f32.xlu1 %v2338_v50  ;;  %3976 = vmatprep.subr.bf16.mxu0 %v4472_v33 }
 0x698   : > { %v2341_v24 = vsel %vm1442_vm2, %v4994_v20, 0.0  ;;  %v5002_v2 = vpop.eup %4311 }
 0x699   : > { %v2211_v53 = vsel %vm1442_vm2, %v5002_v2, 0.0 }
 0x69b   : > { %2342 = vadd.xlane.f32.xlu1 %v2341_v24 }
 0x6ac   : > { %2095 = vrot.lane.b32.xlu1 %v4804_v0, %s4474_s20 }
 0x6b4   : > { %2212 = vadd.xlane.f32.xlu0 %v2211_v53 }
 0x6ca   : > { %2222 = vrot.lane.b32.xlu0 %v4804_v0, %s4475_s6 }
 0x6ce   : > { %2349 = vrot.lane.b32.xlu0 %v4804_v0, %s4476_s28 }
 0x6f4   : > { %v1579_v6 = vpop.xlane.xlu0 %1578 }
 0x6f5   : > { %4313 = vrcp.f32 %v1579_v6 }
 0x6f8   : > { %v1582_v16 = vpop.xlane.xlu1 %1581 }
 0x6f9   : > { %4315 = vrcp.f32 %v1582_v16 }
 0x6fc   : > { %v1708_v56 = vpop.xlane.xlu0 %1707 }
 0x6fd   : > { %4317 = vrcp.f32 %v1708_v56 }
 0x6fe   : > { %v1711_v7 = vpop.xlane.xlu1 %1710 }
 0x6ff   : > { %4319 = vrcp.f32 %v1711_v7  ;;  %v4314_v8 = vpop.eup %4313 }
 0x700   : > { %v1585_v12 = vmul.f32 %v4314_v8, %v4930_v54 }
 0x703   : > { %v4316_v10 = vpop.eup %4315 }
 0x704   : > { %v1586_v14 = vmul.f32 %v4316_v10, %v4935_v58  ;;  %v1836_v60 = vpop.xlane.xlu0 %1835 }
 0x705   : > { %4321 = vrcp.f32 %v1836_v60 }
 0x706   : > { %v1839_v17 = vpop.xlane.xlu1 %1838  ;;  %v1587_v18 = vpack.c.bf16 %v1586_v14, %v1585_v12 }
 0x707   : > { %4323 = vrcp.f32 %v1839_v17  ;;  %v4318_v63 = vpop.eup %4317 }
 0x708   : > { %3967 = vmatmul.mubr.msk.bf16.vlgmr.msra.gmra.mrb[16].mxu0 %vm1442_vm2, %v1587_v18  ;;  %v1714_v54 = vmul.f32 %v4318_v63, %v4940_v1 }
 0x709   : > { %v4320_v21 = vpop.eup %4319  ;;  %3977 = vmatpush3.bf16.msra.mxu0 %v1718_v5  ;;  %3978 = vmatprep.mubr.msk.bf16.mxu0 %vm4473_vm0, %v4472_v33 }
 0x70a   : > { %v1715_v22 = vmul.f32 %v4320_v21, %v4944_v4  ;;  %3988 = vmatprep.subr.bf16.mxu0 %v4472_v33 }
 0x70c   : > { %v1963_v58 = vpop.xlane.xlu0 %1962  ;;  %v1716_v27 = vpack.c.bf16 %v1715_v22, %v1714_v54 }
 0x70d   : > { %4325 = vrcp.f32 %v1963_v58 }
 0x70e   : > { %v1966_v25 = vpop.xlane.xlu1 %1965 }
 0x70f   : > { %4327 = vrcp.f32 %v1966_v25  ;;  %v4322_v9 = vpop.eup %4321 }
 0x710   : > { %3979 = vmatmul.mubr.msk.bf16.vlgmr.msra.gmra.mrb[20].mxu0 %vm1442_vm2, %v1716_v27  ;;  %v1846_v30 = vpop.permute.xlu0 %1845  ;;  %v1842_v1 = vmul.f32 %v4322_v9, %v4950_v11 }
 0x711   : > { %v4324_v31 = vpop.eup %4323  ;;  %3989 = vmatpush3.bf16.msra.mxu0 %v1846_v30  ;;  %3990 = vmatprep.mubr.msk.bf16.mxu0 %vm4473_vm0, %v4472_v33  ;;  %v4181_v30 = vld [vmem:[%s4609_s30] sm:$0xff]  }
 0x712   : > { %v1843_v4 = vmul.f32 %v4324_v31, %v4954_v15  ;;  %4000 = vmatprep.subr.bf16.mxu0 %v4472_v33  ;;  %v4182_v31 = vld [vmem:[%s4609_s30 + $0x8] sm:$0xff]   ;;  %4042 = vmatprep.subr.bf16.mxu1 %v4181_v30 }
 0x713   : > { %4043 = vmatpush3.bf16.msra.mxu1 %v4181_v30 }
 0x714   : > { %v2085_v13 = vpop.xlane.xlu1 %2084  ;;  %v1844_v32 = vpack.c.bf16 %v1843_v4, %v1842_v1  ;;  %4044 = vmatprep.subr.bf16.mxu1 %v4182_v31  ;;  %v4183_v4 = vld [vmem:[%s4609_s30 + $0x10] sm:$0xff]  }
 0x717   : > { %v4326_v34 = vpop.eup %4325  ;;  %4045 = vmatpush3.bf16.msra.mxu1 %v4182_v31 }
 0x718   : > { %3991 = vmatmul.mubr.msk.bf16.vlgmr.msra.gmra.mrb[24].mxu0 %vm1442_vm2, %v1844_v32  ;;  %v2088_v45 = vpop.xlane.xlu1 %2087  ;;  %v1969_v15 = vmul.f32 %v4326_v34, %v4960_v23  ;;  %4046 = vmatprep.subr.bf16.mxu1 %v4183_v4 }
 0x719   : > { %v4328_v40 = vpop.eup %4327  ;;  %4001 = vmatpush3.bf16.msra.mxu0 %v4804_v0  ;;  %4002 = vmatprep.mubr.msk.bf16.mxu0 %vm4473_vm0, %v4472_v33  ;;  %4329 = vrcp.f32 %v2088_v45  ;;  %v4185_v45 = vld [vmem:[%s4609_s30 + $0x20] sm:$0xff]  }
 0x71a   : > { %v1970_v42 = vmul.f32 %v4328_v40, %v4964_v28  ;;  %4012 = vmatprep.subr.bf16.mxu0 %v4472_v33  ;;  %4331 = vrcp.f32 %v2085_v13  ;;  %v4184_v13 = vld [vmem:[%s4609_s30 + $0x18] sm:$0xff]  }
 0x71b   : > { %4047 = vmatpush3.bf16.msra.mxu1 %v4183_v4 }
 0x71c   : > { %v1971_v11 = vpack.c.bf16 %v1970_v42, %v1969_v15  ;;  %4048 = vmatprep.subr.bf16.mxu1 %v4184_v13  ;;  %v4186_v15 = vld [vmem:[%s4609_s30 + $0x28] sm:$0xff]  }
 0x71e   : > { %v2216_v46 = vpop.xlane.xlu1 %2215 }
 0x71f   : > { %4333 = vrcp.f32 %v2216_v46  ;;  %4049 = vmatpush3.bf16.msra.mxu1 %v4184_v13  ;;  %v4187_v46 = vld [vmem:[%s4609_s30 + $0x30] sm:$0xff]  }
 0x720   : > { %4003 = vmatmul.mubr.msk.bf16.vlgmr.msra.gmra.mrb[28].mxu0 %vm1442_vm2, %v1971_v11  ;;  %4050 = vmatprep.subr.bf16.mxu1 %v4185_v45 }
 0x721   : > { %4014 = vmatprep.mubr.msk.bf16.mxu0 %vm4473_vm0, %v4472_v33 }
 0x723   : > { %v4330_v19 = vpop.eup %4329  ;;  %4051 = vmatpush3.bf16.msra.mxu1 %v4185_v45 }
 0x724   : > { %v2340_v0 = vpop.xlane.xlu1 %2339  ;;  %v4332_v49 = vpop.eup %4331  ;;  %v2092_v28 = vmul.f32 %v4330_v19, %v4973_v43  ;;  %4052 = vmatprep.subr.bf16.mxu1 %v4186_v15 }
 0x725   : > { %v2091_v51 = vmul.f32 %v4332_v49, %v4969_v37 }
 0x727   : > { %v2093_v23 = vpack.c.bf16 %v2092_v28, %v2091_v51  ;;  %4053 = vmatpush3.bf16.msra.mxu1 %v4186_v15 }
 0x728   : > { %v2343_v48 = vpop.xlane.xlu1 %2342  ;;  %4054 = vmatprep.subr.bf16.mxu1 %v4187_v46 }
 0x729   : > { %v4334_v37 = vpop.eup %4333 }
 0x72a   : > { %v2220_v26 = vmul.f32 %v4334_v37, %v4979_v41 }
 0x72b   : > { %4055 = vmatpush3.bf16.msra.mxu1 %v4187_v46 }
 0x72c   : > { %v2096_v52 = vpop.permute.xlu1 %2095 }
 0x72d   : > { %4013 = vmatpush3.bf16.msra.mxu0 %v2096_v52 }
 0x72e   : > { %4024 = vmatprep.subr.bf16.mxu0 %v4472_v33 }
 0x730   : > { %4015 = vmatmul.mubr.msk.bf16.vlgmr.msra.gmra.mrb[32].mxu0 %vm1442_vm2, %v2093_v23 }
 0x731   : > { %4026 = vmatprep.mubr.msk.bf16.mxu0 %vm4473_vm0, %v4472_v33 }
 0x741   : > { %v2213_v55 = vpop.xlane.xlu0 %2212 }
 0x742   : > { %4335 = vrcp.f32 %v2213_v55 }
 0x743   : > { %4337 = vrcp.f32 %v2343_v48 }
 0x744   : > { %4339 = vrcp.f32 %v2340_v0  ;;  %v4188_v0 = vld [vmem:[%s4609_s30 + $0x38] sm:$0xff]  }
 0x745   : > { %v2223_v44 = vpop.permute.xlu0 %2222  ;;  %4056 = vmatprep.subr.bf16.mxu1 %v4188_v0 }
 0x746   : > { %4025 = vmatpush3.bf16.msra.mxu0 %v2223_v44  ;;  %4057 = vmatpush3.bf16.msra.mxu1 %v4188_v0  ;;  %v4203_v0 = vld [vmem:[%s4637_s7 + $0x44] ss:$16 sps:$4 sm:$0xff]  }
 0x747   : > { %4036 = vmatprep.subr.bf16.mxu0 %v4472_v33 }
 0x749   : > { %v2350_v50 = vpop.permute.xlu0 %2349 }
 0x74c   : > { %v4336_v43 = vpop.eup %4335 }
 0x74d   : > { %v2219_v57 = vmul.f32 %v4336_v43, %v5002_v2  ;;  %v4338_v61 = vpop.eup %4337 }
 0x74e   : > { %v4340_v24 = vpop.eup %4339  ;;  %v2347_v62 = vmul.f32 %v4338_v61, %v4994_v20 }
 0x74f   : > { %v2221_v29 = vpack.c.bf16 %v2220_v26, %v2219_v57  ;;  %v2346_v3 = vmul.f32 %v4340_v24, %v4985_v47 }
 0x751   : > { %4027 = vmatmul.mubr.msk.bf16.vlgmr.msra.gmra.mrb[36].mxu0 %vm1442_vm2, %v2221_v29  ;;  %v2348_v53 = vpack.c.bf16 %v2347_v62, %v2346_v3  ;;  %v3691_v62 = vld [vmem:[%s5365_s5] ss:$0 sm:$0xff] }
 0x752   : > { %4037 = vmatpush3.bf16.msra.mxu0 %v2350_v50  ;;  %4038 = vmatprep.mubr.msk.bf16.mxu0 %vm4473_vm0, %v4472_v33 }
 0x759   : > { %4039 = vmatmul.mubr.msk.bf16.vlgmr.msra.gmra.mrb[40].mxu0 %vm1442_vm2, %v2348_v53 }
 0x75a   : > { %2842 = vmatprep.mubr.bf16.mxu0 %v4471_v59 }
 0x768   : > { %v1503_v41 = vpop.f32.mrb[12].mxu0 }
 0x769   : > { %v3956_v2 = vpop.f32.mrb[13].mxu0 }
 0x76a   : > { %v1506_v5 = vpop.f32.mrb[14].mxu0 }
 0x76b   : > { %v1510_v6 = vpack.c.bf16 %v1506_v5, %v1503_v41  ;;  %v3957_v16 = vpop.f32.mrb[15].mxu0 }
 0x76c   : > { %v4413_v16 = vld [vmem:[#allocation3] sm:$0xff] }
 0x76d   : > { %1511 = vst.msk [vmem:[#allocation2] sm:$0xff] %vm1394_vm1, %v1510_v6 }
 0x7db   : > { %v1629_v56 = vpop.f32.mrb[16].mxu0 }
 0x7dc   : > { %v3968_v7 = vpop.f32.mrb[17].mxu0 }
 0x7dd   : > { %v1632_v8 = vpop.f32.mrb[18].mxu0 }
 0x7de   : > { %v1636_v33 = vpack.c.bf16 %v1632_v8, %v1629_v56  ;;  %v3969_v10 = vpop.f32.mrb[19].mxu0  ;;  %v4414_v8 = vld [vmem:[#allocation3 + $0x8] sm:$0xff] }
 0x7df   : > { %v4415_v10 = vld [vmem:[#allocation3 + $0x10] sm:$0xff] }
 0x7e0   : > { %1638 = vrot.lane.b32.xlu0 %v1636_v33, %s4476_s28 }
 0x7e3   : > { %v1757_v47 = vpop.f32.mrb[20].mxu0 }
 0x7e4   : > { %v3980_v20 = vpop.f32.mrb[21].mxu0 }
 0x7e5   : > { %v1760_v12 = vpop.f32.mrb[22].mxu0 }
 0x7e6   : > { %v1764_v14 = vpack.c.bf16 %v1760_v12, %v1757_v47  ;;  %v3981_v60 = vpop.f32.mrb[23].mxu0  ;;  %v4416_v12 = vld [vmem:[#allocation3 + $0x18] sm:$0xff] }
 0x7e7   : > { %v4189_v60 = vld [vmem:[%s4637_s7] ss:$16 sps:$4 sm:$0xff]  }
 0x7e8   : > { %1766 = vrot.lane.b32.xlu1 %v1764_v14, %s4475_s6 }
 0x7eb   : > { %v1885_v17 = vpop.f32.mrb[24].mxu0 }
 0x7ec   : > { %v3992_v18 = vpop.f32.mrb[25].mxu0 }
 0x7ed   : > { %v1888_v63 = vpop.f32.mrb[26].mxu0  ;;  %v4192_v18 = vld [vmem:[%s4637_s7 + $0x8] ss:$16 sps:$4 sm:$0xff]  }
 0x7ee   : > { %v1892_v21 = vpack.c.bf16 %v1888_v63, %v1885_v17  ;;  %v3993_v22 = vpop.f32.mrb[27].mxu0  ;;  %v4191_v17 = vld [vmem:[%s4637_s7 + $0x4] ss:$16 sps:$4 sm:$0xff]   ;;  %v4194_v63 = vld [vmem:[%s4637_s7 + $0xc] ss:$16 sps:$4 sm:$0xff]  }
 0x7ef   : > { %2810 = vmatprep.subr.bf16.mxu0 %v4191_v17  ;;  %v4200_v22 = vld [vmem:[%s4637_s7 + $0x2c] ss:$16 sps:$4 sm:$0xff]   ;;  %2863 = vmatprep.subr.bf16.mxu1 %v4194_v63 }
 0x7f0   : > { %1894 = vrot.lane.b32.xlu1 %v1892_v21, %s4474_s20  ;;  %v4197_v21 = vld [vmem:[%s4637_s7 + $0x24] ss:$16 sps:$4 sm:$0xff]   ;;  %2811 = vmatpush1.bf16.msra.mxu0 %v4189_v60 }
 0x7f1   : > { %2812 = vmatprep.subr.bf16.mxu0 %v4197_v21 }
 0x7f3   : > { %v2009_v54 = vpop.f32.mrb[28].mxu0 }
 0x7f4   : > { %v4004_v58 = vpop.f32.mrb[29].mxu0 }
 0x7f5   : > { %v2012_v25 = vpop.f32.mrb[30].mxu0  ;;  %v4198_v58 = vld [vmem:[%s4637_s7 + $0x28] ss:$16 sps:$4 sm:$0xff]  }
 0x7f6   : > { %v2016_v27 = vpack.c.bf16 %v2012_v25, %v2009_v54  ;;  %v4005_v9 = vpop.f32.mrb[31].mxu0  ;;  %v4195_v54 = vld [vmem:[%s4637_s7 + $0x20] ss:$16 sps:$4 sm:$0xff]  }
 0x7f7   : > { %2813 = vmatpush1.bf16.msra.mxu0 %v4195_v54  ;;  %v3700_v54 = vld [vmem:[%s5366_s26] ss:$0 sm:$0xff] }
 0x7f8   : > { %2017 = vst.msk [vmem:[#allocation2 + $0x8] sm:$0xff] %vm1394_vm1, %v2016_v27  ;;  %2814 = vmatprep.subr.bf16.mxu0 %v4203_v0 }
 0x803   : > { %v2135_v1 = vpop.f32.mrb[32].mxu0 }
 0x804   : > { %v4016_v32 = vpop.f32.mrb[33].mxu0 }
 0x805   : > { %v2138_v34 = vpop.f32.mrb[34].mxu0 }
 0x806   : > { %v2142_v40 = vpack.c.bf16 %v2138_v34, %v2135_v1  ;;  %v4017_v42 = vpop.f32.mrb[35].mxu0 }
 0x808   : > { %2144 = vrot.lane.b32.xlu0 %v2142_v40, %s4476_s28 }
 0x824   : > { %v2262_v11 = vpop.f32.mrb[36].mxu0 }
 0x825   : > { %v4028_v19 = vpop.f32.mrb[37].mxu0 }
 0x826   : > { %v2265_v48 = vpop.f32.mrb[38].mxu0  ;;  %v4206_v19 = vld [vmem:[%s4637_s7 + $0x4c] ss:$16 sps:$4 sm:$0xff]  }
 0x827   : > { %v2269_v49 = vpack.c.bf16 %v2265_v48, %v2262_v11  ;;  %v4029_v28 = vpop.f32.mrb[39].mxu0  ;;  %v4201_v48 = vld [vmem:[%s4637_s7 + $0x40] ss:$16 sps:$4 sm:$0xff]  }
 0x828   : > { %2815 = vmatpush1.bf16.msra.mxu0 %v4201_v48  ;;  %v4209_v28 = vld [vmem:[%s4637_s7 + $0x64] ss:$16 sps:$4 sm:$0xff]  }
 0x829   : > { %2271 = vrot.lane.b32.xlu0 %v2269_v49, %s4475_s6  ;;  %v4204_v49 = vld [vmem:[%s4637_s7 + $0x48] ss:$16 sps:$4 sm:$0xff]   ;;  %2816 = vmatprep.subr.bf16.mxu0 %v4209_v28  ;;  %v4237_v48 = vld [vmem:[%s4648_s4 + $0x40] sm:$0xff]  }
 0x82a   : > { %v4240_v28 = vld [vmem:[%s4648_s4 + $0x80] sm:$0xff]  }
 0x82c   : > { %v2389_v51 = vpop.f32.mrb[40].mxu0 }
 0x82d   : > { %v4040_v52 = vpop.f32.mrb[41].mxu0 }
 0x82e   : > { %v2392_v23 = vpop.f32.mrb[42].mxu0  ;;  %v4207_v52 = vld [vmem:[%s4637_s7 + $0x60] ss:$16 sps:$4 sm:$0xff]  }
 0x82f   : > { %v2396_v55 = vpack.c.bf16 %v2392_v23, %v2389_v51  ;;  %v4041_v44 = vpop.f32.mrb[43].mxu0  ;;  %v4212_v51 = vld [vmem:[%s4637_s7 + $0x6c] ss:$16 sps:$4 sm:$0xff]   ;;  %v4210_v23 = vld [vmem:[%s4637_s7 + $0x68] ss:$16 sps:$4 sm:$0xff]   ;;  %2817 = vmatpush1.bf16.msra.mxu0 %v4207_v52 }
 0x830   : > { %v4218_v44 = vld [vmem:[%s4637_s7 + $0x8c] ss:$16 sps:$4 sm:$0xff]  }
 0x831   : > { %2398 = vrot.lane.b32.xlu1 %v2396_v55, %s4474_s20  ;;  %v4215_v55 = vld [vmem:[%s4637_s7 + $0x84] ss:$16 sps:$4 sm:$0xff]   ;;  %v4243_v52 = vld [vmem:[%s4648_s4 + $0x8] sm:$0xff]  }
 0x832   : > { %2818 = vmatprep.subr.bf16.mxu0 %v4215_v55  ;;  %v4245_v55 = vld [vmem:[%s4648_s4 + $0x50] sm:$0xff]  }
 0x852   : > { %v1639_v37 = vpop.permute.xlu0 %1638 }
 0x853   : > { %1642 = vst.msk [vmem:[#allocation2] sm:$0xff] %vm1641_vm3, %v1639_v37  ;;  %v4213_v37 = vld [vmem:[%s4637_s7 + $0x80] ss:$16 sps:$4 sm:$0xff]  }
 0x854   : > { %2819 = vmatpush1.bf16.msra.mxu0 %v4213_v37  ;;  %v4247_v37 = vld [vmem:[%s4648_s4 + $0x10] sm:$0xff]  }
 0x85a   : > { %v1767_v43 = vpop.permute.xlu1 %1766 }
 0x85b   : > { %1770 = vst.msk [vmem:[#allocation2] sm:$0xff] %vm1769_vm4, %v1767_v43  ;;  %v4216_v43 = vld [vmem:[%s4637_s7 + $0x88] ss:$16 sps:$4 sm:$0xff]  }
 0x862   : > { %v1895_v26 = vpop.permute.xlu1 %1894 }
 0x863   : > { %1898 = vst.msk [vmem:[#allocation2] sm:$0xff] %vm1897_vm5, %v1895_v26  ;;  %v4221_v26 = vld [vmem:[%s4637_s7 + $0xa4] ss:$16 sps:$4 sm:$0xff]  }
 0x864   : > { %2820 = vmatprep.subr.bf16.mxu0 %v4221_v26  ;;  %v4249_v26 = vld [vmem:[%s4648_s4 + $0x58] sm:$0xff]  }
 0x86a   : > { %v2402_v57 = vld [vmem:[#allocation2] sm:$0xff] }
 0x86b   : > { %4058 = vmatprep.mubr.bf16.mxu1 %v2402_v57  ;;  %v4224_v57 = vld [vmem:[%s4637_s7 + $0xac] ss:$16 sps:$4 sm:$0xff]  }
 0x87a   : > { %v2145_v29 = vpop.permute.xlu0 %2144 }
 0x87b   : > { %2147 = vst.msk [vmem:[#allocation2 + $0x8] sm:$0xff] %vm1641_vm3, %v2145_v29  ;;  %v4219_v29 = vld [vmem:[%s4637_s7 + $0xa0] ss:$16 sps:$4 sm:$0xff]  }
 0x87c   : > { %2821 = vmatpush1.bf16.msra.mxu0 %v4219_v29  ;;  %v4251_v29 = vld [vmem:[%s4648_s4 + $0x18] sm:$0xff]  }
 0x89b   : > { %v2272_v61 = vpop.permute.xlu0 %2271 }
 0x89c   : > { %2274 = vst.msk [vmem:[#allocation2 + $0x8] sm:$0xff] %vm1769_vm4, %v2272_v61  ;;  %v4222_v61 = vld [vmem:[%s4637_s7 + $0xa8] ss:$16 sps:$4 sm:$0xff]  }
 0x8a3   : > { %v2399_v50 = vpop.permute.xlu1 %2398 }
 0x8a4   : > { %2401 = vst.msk [vmem:[#allocation2 + $0x8] sm:$0xff] %vm1897_vm5, %v2399_v50  ;;  %v4225_v50 = vld [vmem:[%s4637_s7 + $0xc0] ss:$16 sps:$4 sm:$0xff]  }
 0x8ab   : > { %v2403_v24 = vld [vmem:[#allocation2 + $0x8] sm:$0xff] }
 0x8ac   : > { %4059 = vmatmul.mubr.bf16.vlgmr.msra.gmra.mrb[32].mxu1 %v2403_v24  ;;  %v4227_v24 = vld [vmem:[%s4637_s7 + $0xc4] ss:$16 sps:$4 sm:$0xff]  }
 0x8ad   : > { %2895 = vmatprep.mubr.bf16.mxu1 %v4471_v59  ;;  %2864 = vmatpush1.bf16.msra.mxu1 %v4192_v18 }
 0x8ae   : > { %2865 = vmatprep.subr.bf16.mxu1 %v4200_v22  ;;  %2822 = vmatprep.subr.bf16.mxu0 %v4227_v24  ;;  %v4254_v24 = vld [vmem:[%s4648_s4 + $0xe0] sm:$0xff]  }
 0x8af   : > { %2823 = vmatpush1.bf16.msra.mxu0 %v4225_v50  ;;  %v4253_v50 = vld [vmem:[%s4648_s4 + $0x60] sm:$0xff]  }
 0x8b1   : > { %2866 = vmatpush1.bf16.msra.mxu1 %v4198_v58 }
 0x8b2   : > { %2867 = vmatprep.subr.bf16.mxu1 %v4206_v19 }
 0x8b5   : > { %2868 = vmatpush1.bf16.msra.mxu1 %v4204_v49  ;;  %v4239_v49 = vld [vmem:[%s4648_s4] sm:$0xff]  }
 0x8b6   : > { %2869 = vmatprep.subr.bf16.mxu1 %v4212_v51  ;;  %v4242_v51 = vld [vmem:[%s4648_s4 + $0xc8] sm:$0xff]  }
 0x8b9   : > { %2870 = vmatpush1.bf16.msra.mxu1 %v4210_v23  ;;  %v4244_v23 = vld [vmem:[%s4648_s4 + $0x88] sm:$0xff]  }
 0x8ba   : > { %2871 = vmatprep.subr.bf16.mxu1 %v4218_v44  ;;  %v4246_v44 = vld [vmem:[%s4648_s4 + $0xd0] sm:$0xff]  }
 0x8bd   : > { %2872 = vmatpush1.bf16.msra.mxu1 %v4216_v43  ;;  %v4248_v43 = vld [vmem:[%s4648_s4 + $0x90] sm:$0xff]  }
 0x8be   : > { %2873 = vmatprep.subr.bf16.mxu1 %v4224_v57  ;;  %v4250_v57 = vld [vmem:[%s4648_s4 + $0xd8] sm:$0xff]  }
 0x8c1   : > { %2874 = vmatpush1.bf16.msra.mxu1 %v4222_v61  ;;  %v4252_v61 = vld [vmem:[%s4648_s4 + $0x98] sm:$0xff]  }
 0x97f   : > { %v4060_v3 = vpop.f32.mrb[32].mxu1 }
 0x980   : > { %v2509_v53 = vpop.f32.mrb[33].mxu1  ;;  %v2518_v6 = vadd.f32 %v4060_v3, %v3691_v62  ;;  %v4230_v3 = vld [vmem:[%s4637_s7 + $0xcc] ss:$16 sps:$4 sm:$0xff]  }
 0x981   : > { %v2510_v41 = vadd.f32 %v3691_v62, %v2509_v53  ;;  %v4061_v2 = vpop.f32.mrb[34].mxu1  ;;  %v4233_v53 = vld [vmem:[%s4637_s7 + $0xe4] ss:$16 sps:$4 sm:$0xff]   ;;  %2875 = vmatprep.subr.bf16.mxu1 %v4230_v3 }
 0x982   : > { %v2512_v5 = vpop.f32.mrb[35].mxu1  ;;  %v5077_v47 = vadd.f32 %v4415_v10, %v2518_v6  ;;  %v2521_v20 = vadd.f32 %v4061_v2, %v3691_v62  ;;  %v4231_v2 = vld [vmem:[%s4637_s7 + $0xe0] ss:$16 sps:$4 sm:$0xff]   ;;  %2824 = vmatprep.subr.bf16.mxu0 %v4233_v53  ;;  %v4257_v53 = vld [vmem:[%s4648_s4 + $0x68] sm:$0xff]  }
 0x983   : > { %v5072_v56 = vadd.f32 %v4413_v16, %v2510_v41  ;;  %v2513_v7 = vadd.f32 %v3691_v62, %v2512_v5  ;;  %v4228_v62 = vld [vmem:[%s4637_s7 + $0xc8] ss:$16 sps:$4 sm:$0xff]   ;;  %v4236_v41 = vld [vmem:[%s4637_s7 + $0xec] ss:$16 sps:$4 sm:$0xff]   ;;  %2825 = vmatpush1.bf16.msra.mxu0 %v4231_v2  ;;  %v4256_v3 = vld [vmem:[%s4648_s4 + $0xa0] sm:$0xff]  }
 0x984   : > { %v5081_v14 = vadd.f32 %v4416_v12, %v2521_v20  ;;  %2876 = vmatpush1.bf16.msra.mxu1 %v4228_v62  ;;  %v4234_v5 = vld [vmem:[%s4637_s7 + $0xe8] ss:$16 sps:$4 sm:$0xff]   ;;  %3870 = vmatprep.subr.bf16.mxu0 %v4237_v48  ;;  %v4255_v62 = vld [vmem:[%s4648_s4 + $0x20] sm:$0xff]  }
 0x985   : > { %v5074_v33 = vadd.f32 %v4414_v8, %v2513_v7  ;;  %2530 = vadd.xlane.f32.xlu0 %v5072_v56  ;;  %2877 = vmatprep.subr.bf16.mxu1 %v4236_v41  ;;  %v4258_v41 = vld [vmem:[%s4648_s4 + $0xe8] sm:$0xff]  }
 0x986   : > { %v4259_v2 = vld [vmem:[%s4648_s4 + $0x28] sm:$0xff]  }
 0x987   : > { %2532 = vadd.xlane.f32.xlu1 %v5074_v33 }
 0x988   : > { %2878 = vmatpush1.bf16.msra.mxu1 %v4234_v5  ;;  %v4260_v5 = vld [vmem:[%s4648_s4 + $0xa8] sm:$0xff]  }
 0x989   : > { %2534 = vadd.xlane.f32.xlu0 %v5077_v47 }
 0x98d   : > { %2536 = vadd.xlane.f32.xlu0 %v5081_v14 }
 0xa12   : > { %v2531_v25 = vpop.xlane.xlu0 %2530 }
 0xa13   : > { %v2538_v27 = vmul.f32 0.0078125, %v2531_v25 }
 0xa14   : > { %v2533_v9 = vpop.xlane.xlu1 %2532 }
 0xa15   : > { %v5093_v30 = vsub.f32 %v5072_v56, %v2538_v27  ;;  %v2539_v31 = vmul.f32 0.0078125, %v2533_v9 }
 0xa16   : > { %v2535_v4 = vpop.xlane.xlu0 %2534 }
 0xa17   : > { %v5096_v1 = vsub.f32 %v5074_v33, %v2539_v31  ;;  %v2540_v13 = vmul.f32 0.0078125, %v2535_v4  ;;  %v2546_v32 = vmul.f32 %v5093_v30, %v5093_v30  ;;  %v3701_v4 = vld [vmem:[%s5367_s19] ss:$0 sm:$0xff] }
 0xa19   : > { %v5101_v34 = vsub.f32 %v5077_v47, %v2540_v13  ;;  %2550 = vadd.xlane.f32.xlu0 %v2546_v32  ;;  %v2547_v40 = vmul.f32 %v5096_v1, %v5096_v1 }
 0xa1a   : > { %v2537_v42 = vpop.xlane.xlu0 %2536 }
 0xa1b   : > { %v2541_v45 = vmul.f32 0.0078125, %v2537_v42  ;;  %2552 = vadd.xlane.f32.xlu1 %v2547_v40  ;;  %v2548_v15 = vmul.f32 %v5101_v34, %v5101_v34 }
 0xa1d   : > { %v5108_v11 = vsub.f32 %v5081_v14, %v2541_v45  ;;  %2554 = vadd.xlane.f32.xlu0 %v2548_v15 }
 0xa1f   : > { %v2549_v46 = vmul.f32 %v5108_v11, %v5108_v11 }
 0xa21   : > { %2556 = vadd.xlane.f32.xlu1 %v2549_v46 }
 0xaa6   : > { %v2551_v6 = vpop.xlane.xlu0 %2550 }
 0xaa7   : > { %v2558_v16 = vmul.f32 0.0078125, %v2551_v6  ;;  %v4261_v6 = vld [vmem:[%s4648_s4 + $0x70] sm:$0xff]  }
 0xaa8   : > { %v2553_v7 = vpop.xlane.xlu1 %2552 }
 0xaa9   : > { %v2562_v8 = vadd.f32 1e-05, %v2558_v16  ;;  %v2559_v10 = vmul.f32 0.0078125, %v2553_v7  ;;  %v4262_v16 = vld [vmem:[%s4648_s4 + $0xf0] sm:$0xff]  }
 0xaaa   : > { %v2555_v20 = vpop.xlane.xlu0 %2554  ;;  %v4263_v7 = vld [vmem:[%s4648_s4 + $0x30] sm:$0xff]  }
 0xaab   : > { %4341 = vrsqrt.f32 %v2562_v8  ;;  %v2563_v12 = vadd.f32 1e-05, %v2559_v10  ;;  %v2560_v60 = vmul.f32 0.0078125, %v2555_v20  ;;  %v4264_v8 = vld [vmem:[%s4648_s4 + $0xb0] sm:$0xff]   ;;  %v4265_v10 = vld [vmem:[%s4648_s4 + $0x78] sm:$0xff]  }
 0xaac   : > { %v4266_v20 = vld [vmem:[%s4648_s4 + $0xf8] sm:$0xff]  }
 0xaad   : > { %4343 = vrsqrt.f32 %v2563_v12  ;;  %v2564_v17 = vadd.f32 1e-05, %v2560_v60  ;;  %v4267_v12 = vld [vmem:[%s4648_s4 + $0x38] sm:$0xff]  }
 0xaae   : > { %v2557_v18 = vpop.xlane.xlu1 %2556  ;;  %v4268_v60 = vld [vmem:[%s4648_s4 + $0xb8] sm:$0xff]  }
 0xaaf   : > { %4345 = vrsqrt.f32 %v2564_v17  ;;  %v2561_v63 = vmul.f32 0.0078125, %v2557_v18  ;;  %v2628_v17 = vld [vmem:[%s4643_s23] sm:$0xf]  ;;  %v2644_v18 = vsub.s32 3, %v4789_v35 }
 0xab1   : > { %v2565_v21 = vadd.f32 1e-05, %v2561_v63  ;;  %v2633_v63 = vrot.slane %v2628_v17, %v1148_v36 }
 0xab3   : > { %4347 = vrsqrt.f32 %v2565_v21  ;;  %v5190_v21 = vrot.slane %v2628_v17, %v1156_v39 }
 0xab5   : > { %v4342_v22 = vpop.eup %4341 }
 0xab6   : > { %v2570_v58 = vmul.f32 %v4342_v22, %v5093_v30  ;;  %v5194_v22 = vrot.slane %v2628_v17, %v1152_v38 }
 0xab7   : > { %v4344_v25 = vpop.eup %4343 }
 0xab8   : > { %v2571_v27 = vmul.f32 %v4344_v25, %v5096_v1  ;;  %v2580_v9 = vmul.f32 %v3700_v54, %v2570_v58 }
 0xab9   : > { %v4346_v31 = vpop.eup %4345 }
 0xaba   : > { %v2581_v13 = vmul.f32 %v3700_v54, %v2571_v27  ;;  %v2590_v32 = vadd.f32 %v3701_v4, %v2580_v9  ;;  %v2572_v42 = vmul.f32 %v4346_v31, %v5101_v34 }
 0xabc   : > { %v2591_v40 = vadd.f32 %v3701_v4, %v2581_v13  ;;  %v2582_v15 = vmul.f32 %v3700_v54, %v2572_v42 }
 0xabd   : > { %v4348_v45 = vpop.eup %4347 }
 0xabe   : > { %v2594_v30 = vpack.c.bf16 %v2591_v40, %v2590_v32  ;;  %v2573_v1 = vmul.f32 %v4348_v45, %v5108_v11  ;;  %v2592_v34 = vadd.f32 %v3701_v4, %v2582_v15  ;;  %v4238_v11 = vld [vmem:[%s4648_s4 + $0xc0] sm:$0xff]  }
 0xabf   : > { %3898 = vmatprep.subr.bf16.mxu1 %v4238_v11 }
 0xac0   : > { %2843 = vmatmul.mubr.bf16.vlgmr.msra.gmra.mrb[44].mxu0 %v2594_v30  ;;  %2896 = vmatmul.mubr.bf16.vlgmr.msra.gmra.mrb[36].mxu1 %v2594_v30  ;;  %v2583_v46 = vmul.f32 %v3700_v54, %v2573_v1  ;;  %v5196_v54 = vrot.slane %v2628_v17, %v2644_v18 }
 0xac1   : > { %2852 = vmatprep.mubr.bf16.mxu0 %v4471_v59  ;;  %2905 = vmatprep.mubr.bf16.mxu1 %v4471_v59  ;;  %v4241_v59 = vld [vmem:[%s4648_s4 + $0x48] sm:$0xff]  }
 0xac2   : > { %v2593_v0 = vadd.f32 %v3701_v4, %v2583_v46  ;;  %3871 = vmatpush3.bf16.msra.mxu0 %v4239_v49  ;;  %3899 = vmatpush3.bf16.msra.mxu1 %v4240_v28 }
 0xac3   : > { %3872 = vmatprep.subr.bf16.mxu0 %v4241_v59  ;;  %3900 = vmatprep.subr.bf16.mxu1 %v4242_v51 }
 0xac4   : > { %v2595_v19 = vpack.c.bf16 %v2593_v0, %v2592_v34 }
 0xac6   : > { %3873 = vmatpush3.bf16.msra.mxu0 %v4243_v52  ;;  %3901 = vmatpush3.bf16.msra.mxu1 %v4244_v23 }
 0xac7   : > { %3874 = vmatprep.subr.bf16.mxu0 %v4245_v55  ;;  %3902 = vmatprep.subr.bf16.mxu1 %v4246_v44 }
 0xac8   : > { %2853 = vmatmul.mubr.bf16.gmra.mrb[48].mxu0 %v2595_v19  ;;  %2906 = vmatmul.mubr.bf16.gmra.mrb[40].mxu1 %v2595_v19 }
 0xaca   : > { %3875 = vmatpush3.bf16.msra.mxu0 %v4247_v37  ;;  %3903 = vmatpush3.bf16.msra.mxu1 %v4248_v43 }
 0xacb   : > { %3876 = vmatprep.subr.bf16.mxu0 %v4249_v26  ;;  %3904 = vmatprep.subr.bf16.mxu1 %v4250_v57 }
 0xace   : > { %3877 = vmatpush3.bf16.msra.mxu0 %v4251_v29  ;;  %3905 = vmatpush3.bf16.msra.mxu1 %v4252_v61 }
 0xacf   : > { %3878 = vmatprep.subr.bf16.mxu0 %v4253_v50  ;;  %3906 = vmatprep.subr.bf16.mxu1 %v4254_v24 }
 0xad2   : > { %3879 = vmatpush3.bf16.msra.mxu0 %v4255_v62  ;;  %3907 = vmatpush3.bf16.msra.mxu1 %v4256_v3 }
 0xad3   : > { %3880 = vmatprep.subr.bf16.mxu0 %v4257_v53  ;;  %3908 = vmatprep.subr.bf16.mxu1 %v4258_v41 }
 0xad6   : > { %3881 = vmatpush3.bf16.msra.mxu0 %v4259_v2  ;;  %3909 = vmatpush3.bf16.msra.mxu1 %v4260_v5 }
 0xad7   : > { %3882 = vmatprep.subr.bf16.mxu0 %v4261_v6  ;;  %3910 = vmatprep.subr.bf16.mxu1 %v4262_v16 }
 0xada   : > { %3883 = vmatpush3.bf16.msra.mxu0 %v4263_v7  ;;  %3911 = vmatpush3.bf16.msra.mxu1 %v4264_v8 }
 0xadb   : > { %3884 = vmatprep.subr.bf16.mxu0 %v4265_v10  ;;  %3912 = vmatprep.subr.bf16.mxu1 %v4266_v20 }
 0xade   : > { %3885 = vmatpush3.bf16.msra.mxu0 %v4267_v12  ;;  %3913 = vmatpush3.bf16.msra.mxu1 %v4268_v60 }
 0xb93   : > { %v2844_v58 = vpop.f32.mrb[44].mxu0  ;;  %v2897_v25 = vpop.f32.mrb[36].mxu1 }
 0xb94   : > { %v5198_v27 = vadd.f32 %v2844_v58, %v2633_v63  ;;  %v5201_v9 = vadd.f32 %v2897_v25, %v5190_v21  ;;  %v2846_v31 = vpop.f32.mrb[45].mxu0  ;;  %v2899_v4 = vpop.f32.mrb[37].mxu1 }
 0xb95   : > { %v5204_v36 = vadd.f32 %v2846_v31, %v5194_v22  ;;  %v5207_v39 = vadd.f32 %v2899_v4, %v5196_v54  ;;  %v2848_v35 = vpop.f32.mrb[46].mxu0  ;;  %v2901_v38 = vpop.f32.mrb[38].mxu1 }
 0xb96   : > { %v3734_v13 = vmul.f32 -1.702, %v5198_v27  ;;  %v3736_v32 = vmul.f32 -1.702, %v5201_v9  ;;  %v5211_v40 = vadd.f32 %v2848_v35, %v2633_v63  ;;  %v5214_v42 = vadd.f32 %v2901_v38, %v5190_v21  ;;  %v2850_v45 = vpop.f32.mrb[47].mxu0  ;;  %v2903_v30 = vpop.f32.mrb[39].mxu1 }
 0xb97   : > { %v3735_v1 = vmul.f32 -1.702, %v5204_v36  ;;  %v3737_v15 = vmul.f32 -1.702, %v5207_v39  ;;  %v5219_v46 = vadd.f32 %v2850_v45, %v5194_v22  ;;  %v5222_v0 = vadd.f32 %v2903_v30, %v5196_v54 }
 0xb98   : > { %v2948_v34 = vmul.f32 1.442695, %v3734_v13  ;;  %v2952_v19 = vmul.f32 1.442695, %v3736_v32  ;;  %v3738_v48 = vmul.f32 -1.702, %v5211_v40 }
 0xb99   : > { %v2950_v11 = vmul.f32 1.442695, %v3735_v1  ;;  %v2954_v49 = vmul.f32 1.442695, %v3737_v15  ;;  %v3740_v28 = vmul.f32 -1.702, %v5214_v42 }
 0xb9a   : > { %4349 = vpow2.f32 %v2948_v34  ;;  %v2956_v59 = vmul.f32 1.442695, %v3738_v48  ;;  %v3739_v51 = vmul.f32 -1.702, %v5219_v46  ;;  %v3741_v52 = vmul.f32 -1.702, %v5222_v0 }
 0xb9b   : > { %4351 = vpow2.f32 %v2952_v19  ;;  %v2960_v23 = vmul.f32 1.442695, %v3740_v28  ;;  %v2854_v55 = vpop.f32.mrb[48].mxu0  ;;  %v2907_v44 = vpop.f32.mrb[40].mxu1 }
 0xb9c   : > { %4353 = vpow2.f32 %v2950_v11  ;;  %v2958_v37 = vmul.f32 1.442695, %v3739_v51  ;;  %v5228_v43 = vadd.f32 %v2854_v55, %v2633_v63  ;;  %v2856_v26 = vpop.f32.mrb[49].mxu0  ;;  %v2909_v57 = vpop.f32.mrb[41].mxu1  ;;  %v2962_v29 = vmul.f32 1.442695, %v3741_v52 }
 0xb9d   : > { %4355 = vpow2.f32 %v2954_v49  ;;  %v5231_v61 = vadd.f32 %v2907_v44, %v5190_v21  ;;  %v5234_v50 = vadd.f32 %v2856_v26, %v5194_v22  ;;  %v2858_v24 = vpop.f32.mrb[50].mxu0  ;;  %v2911_v62 = vpop.f32.mrb[42].mxu1  ;;  %v5243_v12 = vadd.f32 %v2909_v57, %v5196_v54 }
 0xb9e   : > { %4357 = vpow2.f32 %v2956_v59  ;;  %v3742_v3 = vmul.f32 -1.702, %v5228_v43  ;;  %v5237_v53 = vadd.f32 %v2858_v24, %v2633_v63  ;;  %v2860_v41 = vpop.f32.mrb[51].mxu0  ;;  %v2913_v2 = vpop.f32.mrb[43].mxu1  ;;  %v5247_v13 = vadd.f32 %v2911_v62, %v5190_v21 }
 0xb9f   : > { %4359 = vpow2.f32 %v2960_v23  ;;  %v3744_v5 = vmul.f32 -1.702, %v5231_v61  ;;  %v3743_v6 = vmul.f32 -1.702, %v5234_v50  ;;  %v3745_v4 = vmul.f32 -1.702, %v5243_v12 }
 0xba0   : > { %4361 = vpow2.f32 %v2958_v37  ;;  %v2964_v16 = vmul.f32 1.442695, %v3742_v3  ;;  %v3746_v7 = vmul.f32 -1.702, %v5237_v53  ;;  %v5250_v30 = vadd.f32 %v2860_v41, %v5194_v22 }
 0xba1   : > { %4363 = vpow2.f32 %v2962_v29  ;;  %v2968_v8 = vmul.f32 1.442695, %v3744_v5  ;;  %v2966_v10 = vmul.f32 1.442695, %v3743_v6  ;;  %v5253_v34 = vadd.f32 %v2913_v2, %v5196_v54 }
 0xba2   : > { %4365 = vpow2.f32 %v2964_v16  ;;  %v2972_v20 = vmul.f32 1.442695, %v3746_v7  ;;  %v2970_v11 = vmul.f32 1.442695, %v3745_v4  ;;  %v3748_v28 = vmul.f32 -1.702, %v5247_v13 }
 0xba3   : > { %4367 = vpow2.f32 %v2968_v8  ;;  %v3747_v22 = vmul.f32 -1.702, %v5250_v30  ;;  %v3749_v52 = vmul.f32 -1.702, %v5253_v34 }
 0xba4   : > { %v4350_v60 = vpop.eup %4349  ;;  %4369 = vpow2.f32 %v2966_v10  ;;  %v2976_v55 = vmul.f32 1.442695, %v3748_v28 }
 0xba5   : > { %v4352_v17 = vpop.eup %4351  ;;  %v2980_v18 = vadd.f32 1.0, %v4350_v60  ;;  %4371 = vpow2.f32 %v2972_v20  ;;  %v2974_v26 = vmul.f32 1.442695, %v3747_v22  ;;  %v2978_v29 = vmul.f32 1.442695, %v3749_v52 }
 0xba6   : > { %v4354_v63 = vpop.eup %4353  ;;  %v2982_v58 = vadd.f32 1.0, %v4352_v17 }
 0xba7   : > { %v4356_v25 = vpop.eup %4355  ;;  %4373 = vrcp.f32 %v2980_v18  ;;  %v2981_v31 = vadd.f32 1.0, %v4354_v63 }
 0xba8   : > { %v4358_v35 = vpop.eup %4357  ;;  %4375 = vrcp.f32 %v2982_v58  ;;  %v2983_v38 = vadd.f32 1.0, %v4356_v25 }
 0xba9   : > { %v4360_v32 = vpop.eup %4359  ;;  %4377 = vrcp.f32 %v2981_v31  ;;  %v2984_v45 = vadd.f32 1.0, %v4358_v35 }
 0xbaa   : > { %v4362_v1 = vpop.eup %4361  ;;  %4379 = vrcp.f32 %v2983_v38  ;;  %v2986_v15 = vadd.f32 1.0, %v4360_v32 }
 0xbab   : > { %v4364_v19 = vpop.eup %4363  ;;  %4381 = vrcp.f32 %v2984_v45  ;;  %v2985_v48 = vadd.f32 1.0, %v4362_v1 }
 0xbac   : > { %v4366_v49 = vpop.eup %4365  ;;  %4383 = vrcp.f32 %v2986_v15  ;;  %v2987_v21 = vadd.f32 1.0, %v4364_v19 }
 0xbad   : > { %4385 = vrcp.f32 %v2985_v48  ;;  %v2988_v59 = vadd.f32 1.0, %v4366_v49  ;;  %v4368_v51 = vpop.eup %4367 }
 0xbae   : > { %4387 = vrcp.f32 %v2987_v21  ;;  %v4370_v23 = vpop.eup %4369  ;;  %v2990_v58 = vadd.f32 1.0, %v4368_v51 }
 0xbaf   : > { %4389 = vpow2.f32 %v2970_v11  ;;  %v4372_v54 = vpop.eup %4371  ;;  %v2989_v31 = vadd.f32 1.0, %v4370_v23 }
 0xbb0   : > { %4391 = vrcp.f32 %v2988_v59  ;;  %v2992_v37 = vadd.f32 1.0, %v4372_v54 }
 0xbb1   : > { %v4374_v44 = vpop.eup %4373 }
 0xbb2   : > { %v4376_v57 = vpop.eup %4375  ;;  %4393 = vrcp.f32 %v2992_v37  ;;  %v3028_v2 = vmul.f32 %v4374_v44, %v5198_v27 }
 0xbb3   : > { %v4378_v24 = vpop.eup %4377  ;;  %4395 = vpow2.f32 %v2976_v55  ;;  %v3030_v16 = vmul.f32 %v4376_v57, %v5201_v9 }
 0xbb4   : > { %v4380_v62 = vpop.eup %4379  ;;  %4397 = vpow2.f32 %v2974_v26  ;;  %v3029_v10 = vmul.f32 %v4378_v24, %v5204_v36 }
 0xbb5   : > { %v4382_v3 = vpop.eup %4381  ;;  %4399 = vpow2.f32 %v2978_v29  ;;  %v3031_v18 = vmul.f32 %v4380_v62, %v5207_v39 }
 0xbb6   : > { %v4384_v41 = vpop.eup %4383  ;;  %v3032_v5 = vmul.f32 %v4382_v3, %v5211_v40  ;;  %4401 = vrcp.f32 %v2990_v58 }
 0xbb7   : > { %v4386_v6 = vpop.eup %4385  ;;  %v3034_v7 = vmul.f32 %v4384_v41, %v5214_v42  ;;  %4403 = vrcp.f32 %v2989_v31 }
 0xbb8   : > { %v4388_v8 = vpop.eup %4387  ;;  %v3044_v20 = vpack.c.bf16 %v3032_v5, %v3028_v2  ;;  %v3033_v60 = vmul.f32 %v4386_v6, %v5219_v46 }
 0xbb9   : > { %v4390_v17 = vpop.eup %4389  ;;  %v3046_v63 = vpack.c.bf16 %v3034_v7, %v3030_v16  ;;  %v3035_v27 = vmul.f32 %v4388_v8, %v5222_v0 }
 0xbba   : > { %v3045_v40 = vpack.c.bf16 %v3033_v60, %v3029_v10  ;;  %v4392_v25 = vpop.eup %4391  ;;  %v2991_v9 = vadd.f32 1.0, %v4390_v17 }
 0xbbb   : > { %v3047_v4 = vpack.c.bf16 %v3035_v27, %v3031_v18  ;;  %v3036_v35 = vmul.f32 %v4392_v25, %v5228_v43 }
 0xbbc   : > { %3347 = vmatprep.mubr.bf16.mxu0 %v3045_v40  ;;  %v4394_v42 = vpop.eup %4393  ;;  %4405 = vrcp.f32 %v2991_v9 }
 0xbbd   : > { %3396 = vmatprep.mubr.bf16.mxu1 %v3047_v4  ;;  %3348 = vmatmul.mubr.bf16.vlgmr.msra.gmra.mrb[52].mxu0 %v3044_v20  ;;  %v4396_v36 = vpop.eup %4395  ;;  %v3040_v46 = vmul.f32 %v4394_v42, %v5237_v53 }
 0xbbe   : > { %3397 = vmatmul.mubr.bf16.vlgmr.msra.gmra.mrb[44].mxu1 %v3046_v63  ;;  %v4398_v39 = vpop.eup %4397  ;;  %v2994_v0 = vadd.f32 1.0, %v4396_v36 }
 0xbbf   : > { %v4400_v38 = vpop.eup %4399  ;;  %v2993_v32 = vadd.f32 1.0, %v4398_v39  ;;  %v3048_v45 = vpack.c.bf16 %v3040_v46, %v3036_v35 }
 0xbc0   : > { %4407 = vrcp.f32 %v2994_v0  ;;  %v2995_v1 = vadd.f32 1.0, %v4400_v38  ;;  %v4402_v15 = vpop.eup %4401 }
 0xbc1   : > { %4409 = vrcp.f32 %v2993_v32  ;;  %v4404_v19 = vpop.eup %4403  ;;  %v3038_v49 = vmul.f32 %v4402_v15, %v5231_v61 }
 0xbc2   : > { %4411 = vrcp.f32 %v2995_v1  ;;  %v3037_v28 = vmul.f32 %v4404_v19, %v5234_v50  ;;  %v3750_v50 = vld [vmem:[%s754_s0] ss:$0 sm:$0xff]  ;;  %s4477_s0 = smov [#allocation3]  }
 0xbc3   : > { %s3431_s24 = sshll.u32 %s4477_s0, 4  ;;  %s3432_s24 = int_to_ptr.vmem [resolvable:$true] %s3431_s24 }
 0xbc4   : > { %s4417_s20 = scalar_lea.vmem %s3432_s24, 512  ;;  %p4424_p10 = scmp.lt.s32.totalorder %s3432_s24, %s3432_s24 }
 0xbc5   : > { %p4418_p7 = scmp.ne.s32.totalorder %s3432_s24, %s4417_s20  ;;  %p4425_p11 = scmp.lt.s32.totalorder %s4417_s20, %s4417_s20 }
 0xbc6   : > { %v4406_v48 = vpop.eup %4405 }
 0xbc7   : > { %v3039_v22 = vmul.f32 %v4406_v48, %v5243_v12  ;;  %p4419_p8 = pnand %p4418_p7, %p5284_p6  ;;  %p4426_p12 = por %p4425_p11, %p4424_p10 }
 0xbc9   : > { %p4420_p9 = pneg %p4419_p8 }
 0xbca   : > { %v4408_v11 = vpop.eup %4407 }
 0xbcb   : > { %v4410_v43 = vpop.eup %4409  ;;  %v3042_v53 = vmul.f32 %v4408_v11, %v5247_v13  ;;  %p4427_p13 = pnand %p4426_p12, %p4420_p9 }
 0xbcc   : > { %v4412_v21 = vpop.eup %4411  ;;  %v3041_v59 = vmul.f32 %v4410_v43, %v5250_v30 }
 0xbcd   : > { %v3043_v51 = vmul.f32 %v4412_v21, %v5253_v34  ;;  %v3050_v52 = vpack.c.bf16 %v3042_v53, %v3038_v49 }
 0xbce   : > { %v3049_v23 = vpack.c.bf16 %v3041_v59, %v3037_v28 }
 0xbcf   : > { %v3051_v54 = vpack.c.bf16 %v3043_v51, %v3039_v22 }
 0xbd0   : > { %3355 = vmatprep.mubr.bf16.mxu0 %v3049_v23 }
 0xbd1   : > { %3404 = vmatprep.mubr.bf16.mxu1 %v3051_v54  ;;  %3356 = vmatmul.mubr.bf16.gmra.mrb[56].mxu0 %v3048_v45 }
 0xbd2   : > { %3405 = vmatmul.mubr.bf16.gmra.mrb[48].mxu1 %v3050_v52 }
 0xc90   : > { %v3886_v61 = vpop.f32.mrb[52].mxu0 }
 0xc91   : > { %v3914_v55 = vpop.f32.mrb[44].mxu1  ;;  %v3887_v13 = vpop.f32.mrb[53].mxu0 }
 0xc92   : > { %v3888_v30 = vadd.f32 %v3887_v13, %v3886_v61  ;;  %v3915_v44 = vpop.f32.mrb[45].mxu1  ;;  %v3889_v12 = vpop.f32.mrb[54].mxu0 }
 0xc93   : > { %v3916_v37 = vadd.f32 %v3915_v44, %v3914_v55  ;;  %v3917_v34 = vpop.f32.mrb[46].mxu1  ;;  %v3890_v26 = vpop.f32.mrb[55].mxu0 }
 0xc94   : > { %v3350_v57 = vadd.f32 %v3888_v30, %v3750_v50  ;;  %v3891_v29 = vadd.f32 %v3890_v26, %v3889_v12  ;;  %v3918_v24 = vpop.f32.mrb[47].mxu1 }
 0xc95   : > { %v3919_v62 = vadd.f32 %v3918_v24, %v3917_v34 }
 0xc96   : > { %v3399_v3 = vadd.f32 %v3916_v37, %v3350_v57  ;;  %v3353_v41 = vadd.f32 %v3891_v29, %v3750_v50 }
 0xc98   : > { %v3413_v2 = vadd.f32 %v3399_v3, %v5072_v56  ;;  %v3402_v5 = vadd.f32 %v3919_v62, %v3353_v41 }
 0xc9a   : > { %3417 = vst [vmem:[#allocation3] sm:$0xff] %v3413_v2  ;;  %v3414_v6 = vadd.f32 %v3402_v5, %v5074_v33 }
 0xc9c   : > { %3418 = vst [vmem:[#allocation3 + $0x8] sm:$0xff] %v3414_v6 }
 0xca4   : > { %v3892_v16 = vpop.f32.mrb[56].mxu0 }
 0xca5   : > { %v3920_v7 = vpop.f32.mrb[48].mxu1  ;;  %v3893_v8 = vpop.f32.mrb[57].mxu0 }
 0xca6   : > { %v3894_v10 = vadd.f32 %v3893_v8, %v3892_v16  ;;  %v3921_v20 = vpop.f32.mrb[49].mxu1  ;;  %v3895_v60 = vpop.f32.mrb[58].mxu0 }
 0xca7   : > { %v3922_v17 = vadd.f32 %v3921_v20, %v3920_v7  ;;  %v3923_v18 = vpop.f32.mrb[50].mxu1  ;;  %v3896_v63 = vpop.f32.mrb[59].mxu0 }
 0xca8   : > { %v3358_v27 = vadd.f32 %v3894_v10, %v3750_v50  ;;  %v3897_v58 = vadd.f32 %v3896_v63, %v3895_v60  ;;  %v3924_v40 = vpop.f32.mrb[51].mxu1 }
 0xca9   : > { %v3925_v25 = vadd.f32 %v3924_v40, %v3923_v18 }
 0xcaa   : > { %v3407_v56 = vadd.f32 %v3922_v17, %v3358_v27  ;;  %v3361_v31 = vadd.f32 %v3897_v58, %v3750_v50 }
 0xcac   : > { %v3415_v33 = vadd.f32 %v3407_v56, %v5077_v47  ;;  %v3410_v4 = vadd.f32 %v3925_v25, %v3361_v31 }
 0xcae   : > { %3419 = vst [vmem:[#allocation3 + $0x10] sm:$0xff] %v3415_v33  ;;  %v3416_v9 = vadd.f32 %v3410_v4, %v5081_v14 }
 0xcb0   : > { %3420 = vst [vmem:[#allocation3 + $0x18] sm:$0xff] %v3416_v9 }
 0xcb1   : > { %4430 = shalt.err (!%p4427_p13)
}
 0xcb2   : > { %s5371_s30 = sld [smem:[#allocation16_spill]] }
 0xcb8   : > { %s4431_s21 = scalar_lea.hbm %s5371_s30, 512 }
 0xcb9   : > { %p4432_p0 = scmp.ne.s32.totalorder %s5371_s30, %s4431_s21  ;;  %p4437_p3 = scmp.lt.u32.totalorder %s4431_s21, %s5371_s30 }
 0xcbb   : > { %p4433_p1 = pnand %p4432_p0, %p5284_p6 }
 0xcbd   : > { %p4434_p2 = pneg %p4433_p1 }
 0xcbf   : > { %p4439_p4 = pnand %p4437_p3, %p4434_p2 }
 0xcc1   : > { %4442 = shalt.err (!%p4439_p4)
}
 0xcc2   : > { %s4478_s25 = smov 128   ;;  %s4479_s18 = smov 8  }
 0xcc3   : > { %4081 = dma.vmem_to_hbm [thread:$0]  (%p5284_p6), %s3432_s24, 512, %s5371_s30, [#allocation4], %s4478_s25, %s4478_s25, %s4479_s18  }
 0xcc4   : > { %4456 = dma.done.wait (%p5284_p6), [#allocation4], 512  }
 0xcc5   : > { %4458 = vsyncadd (%p5284_p6), [#allocation4], 4294966784 }
 0xcc6 PF: > { %s5372_s4 = sld [smem:[#allocation7_spill]]  ;;  %s5373_s24 = sld [smem:[#allocation6_spill]] }
 0xcc7   : > { %s5374_s25 = sld [smem:[#allocation8_spill]] }
 0xccc   : > { %s28_s26 = sadd.s32 1, %s5372_s4  }
 0xccd   : > { %p25_p5 = scmp.ge.s32.totalorder %s28_s26, 4  }
 0xccf   :  { %27 = sbr.rel (!%p25_p5) target bundleno = 11 (0xb), region = 156 }
 0xcd6   :  { %3447 = vsyncpa [#allocation4], 1 }
 0xcd7   :  { %3449 = vsyncpa [#allocation4 + $0x1], 1 }

</bundles_post_ra>
